<compile_context>
chip_gen: v7x
topology: tpu7x:2x2x1
jax: 0.10.0
libtpu: 0.0.40
codegen_flags: <defaults>
</compile_context>

<pallas_src>
import functools

import jax
import jax.numpy as jnp
from jax.experimental import pallas as pl
from jax.experimental.pallas import tpu as pltpu

_MiB = 1024 * 1024


def _vmem_capacity_bytes():
    """Generation-aware VMEM capacity (v5e/v6e: 128 MiB, v7x: 64 MiB per TC)."""
    try:
        return int(pltpu.get_tpu_info().vmem_capacity_bytes)
    except Exception:
        return 64 * _MiB  # conservative default: assume the smallest (v7x per-TC)


def _select_tq_and_vmem_limit(Nt, Nv, C, H):
    """Pick the largest legal query tile that fits the per-generation VMEM budget."""
    cap = _vmem_capacity_bytes()
    # Leave >=24 MiB compiler-scratch headroom; never budget above ~96 MiB.
    budget = max(16 * _MiB, min(96 * _MiB, cap - 24 * _MiB))

    f32 = 4

    def est_bytes(tq):
        attn_blk = H * tq * Nv * f32
        b = 2 * attn_blk                      # attn out block, double-buffered
        b += 2 * tq * C * f32 * 2             # x out + tfeat in, double-buffered
        b += 2 * Nv * C * f32                 # vfeat in, double-buffered
        b += 2 * (4 * C * C + C) * f32        # wq + wkv + wp + bias, double-buffered
        b += 2 * Nv * C * f32                 # cached head-major K/V scratch
        b += 3 * attn_blk + 4 * tq * C * f32  # live f32 intermediates (s/e/a, q/qh/o/y)
        return b

    def valid(tq):
        if tq < 1 or Nt % tq != 0:
            return False
        if tq == Nt:
            return True                       # full-extent blocks are always legal
        # (8,128) block constraints: TQ multiple of 8 and lane-dense flat attn block.
        return tq % 8 == 0 and (tq * Nv) % 128 == 0

    candidates = sorted({t for t in (8, 16, 32, 64, 128, 256, 384, 512, Nt) if t <= Nt},
                        reverse=True)
    tq = None
    for t in candidates:
        if valid(t) and est_bytes(t) <= 0.9 * budget:
            tq = t
            break
    if tq is None:  # nothing fits the budget: take the smallest legal tile
        tq = min(t for t in candidates if valid(t))

    vmem_limit = int(min(cap - 16 * _MiB, max(budget, int(1.25 * est_bytes(tq)))))
    return tq, vmem_limit


def _attention_kernel(vf_ref, tf_ref, wq_ref, wkv_ref, wp_ref, bp_ref,
                      x_ref, attn_ref, kh_ref, vh_ref, *, num_heads):
    """One grid step == (batch element, query tile).

    vf_ref:   (1, Nv, C)      visual features (key/value source)
    tf_ref:   (1, TQ, C)      text features (query source), one query tile
    wq_ref:   (C, C)          W_q^T with the softmax scale pre-folded
    wkv_ref:  (C, 2C)         [W_k^T | W_v^T]
    wp_ref:   (C, C)          W_proj^T
    bp_ref:   (1, C)          proj bias
    x_ref:    (1, TQ, C)      output features
    attn_ref: (1, H, TQ*Nv)   attention probabilities (lane-dense flat layout)
    kh_ref:   (H, Nv, hd)     VMEM scratch, cached head-major keys
    vh_ref:   (H, Nv, hd)     VMEM scratch, cached head-major values
    """
    qi = pl.program_id(1)
    Nv, C = vf_ref.shape[1], vf_ref.shape[2]
    TQ = tf_ref.shape[1]
    hd = C // num_heads

    # K/V projection + head-major relayout: computed once per batch element
    # (qi == 0) and reused for every query tile (qi axis is "arbitrary").
    @pl.when(qi == 0)
    def _():
        vf = vf_ref[0]                                                       # (Nv, C)
        kv = jnp.dot(vf, wkv_ref[...], preferred_element_type=jnp.float32)   # (Nv, 2C)
        k3 = kv[:, :C].reshape(Nv, num_heads, hd)
        v3 = kv[:, C:].reshape(Nv, num_heads, hd)
        kh_ref[...] = jnp.swapaxes(k3, 0, 1)                                 # (H, Nv, hd)
        vh_ref[...] = jnp.swapaxes(v3, 0, 1)                                 # (H, Nv, hd)

    # Query projection (softmax scale already folded into wq on the host).
    tf = tf_ref[0]                                                           # (TQ, C)
    q = jnp.dot(tf, wq_ref[...], preferred_element_type=jnp.float32)         # (TQ, C)
    qh = jnp.swapaxes(q.reshape(TQ, num_heads, hd), 0, 1)                    # (H, TQ, hd)

    kh = kh_ref[...]
    vh = vh_ref[...]

    # Head-batched score matmul + softmax.
    s = jnp.einsum("hqd,hkd->hqk", qh, kh,
                   preferred_element_type=jnp.float32)                       # (H, TQ, Nv)
    s_max = jnp.max(s, axis=-1, keepdims=True)
    e = jnp.exp(s - s_max)
    denom = jnp.sum(e, axis=-1, keepdims=True)
    a = e / denom           # exact divide: attn is a returned output, rows sum to 1

    # Lane-dense attn store: flatten (H, TQ, Nv) -> (H, TQ*Nv); the wrapper
    # reshapes back to (B, H, Nt, Nv) for free (layout-preserving).
    attn_ref[0] = a.reshape(num_heads, TQ * Nv).astype(attn_ref.dtype)
    # attn_drop is identity (p = 0.0 / eval mode).

    # Weighted sum of values + output projection.
    o = jnp.einsum("hqk,hkd->hqd", a, vh,
                   preferred_element_type=jnp.float32)                       # (H, TQ, hd)
    x = jnp.swapaxes(o, 0, 1).reshape(TQ, C)                                 # (TQ, C)
    y = jnp.dot(x, wp_ref[...], preferred_element_type=jnp.float32) + bp_ref[...]
    # proj_drop is identity (p = 0.0 / eval mode).
    x_ref[0] = y.astype(x_ref.dtype)


@functools.lru_cache(maxsize=None)
def _build_attention_call(B, Nv, Nt, C, num_heads):
    TQ, vmem_limit = _select_tq_and_vmem_limit(Nt, Nv, C, num_heads)
    n_q_tiles = Nt // TQ

    kernel = functools.partial(_attention_kernel, num_heads=num_heads)
    grid_spec = pltpu.PrefetchScalarGridSpec(
        num_scalar_prefetch=0,
        grid=(B, n_q_tiles),
        in_specs=[
            pl.BlockSpec((1, Nv, C), lambda b, qi: (b, 0, 0)),     # vfeat
            pl.BlockSpec((1, TQ, C), lambda b, qi: (b, qi, 0)),    # tfeat tile
            pl.BlockSpec((C, C), lambda b, qi: (0, 0)),            # Wq^T * scale
            pl.BlockSpec((C, 2 * C), lambda b, qi: (0, 0)),        # [Wk^T | Wv^T]
            pl.BlockSpec((C, C), lambda b, qi: (0, 0)),            # Wproj^T
            pl.BlockSpec((1, C), lambda b, qi: (0, 0)),            # proj bias
        ],
        out_specs=[
            pl.BlockSpec((1, TQ, C), lambda b, qi: (b, qi, 0)),                # x
            pl.BlockSpec((1, num_heads, TQ * Nv), lambda b, qi: (b, 0, qi)),   # attn (flat)
        ],
        scratch_shapes=[
            pltpu.VMEM((num_heads, Nv, C // num_heads), jnp.float32),   # cached K (head-major)
            pltpu.VMEM((num_heads, Nv, C // num_heads), jnp.float32),   # cached V (head-major)
        ],
    )
    out_shapes = (
        jax.ShapeDtypeStruct((B, Nt, C), jnp.float32),
        jax.ShapeDtypeStruct((B, num_heads, Nt * Nv), jnp.float32),
    )
    return pl.pallas_call(
        kernel,
        out_shape=out_shapes,
        grid_spec=grid_spec,
        compiler_params=pltpu.CompilerParams(
            # batch axis feeds both v7x TensorCores; query-tile axis is
            # sequential so the cached K/V scratch is valid across tiles.
            dimension_semantics=("parallel", "arbitrary"),
            vmem_limit_bytes=vmem_limit,
        ),
    )


@functools.partial(jax.jit, static_argnames=("num_heads",))
def attention_pallas(vfeat, tfeat, wq, wk, wv, wp, bp, *, num_heads):
    """vfeat: (B, Nv, C), tfeat: (B, Nt, C). Weights in PyTorch (out, in) layout."""
    B, Nv, C = vfeat.shape
    Nt = tfeat.shape[1]
    assert C % num_heads == 0
    head_dim = C // num_heads
    scale = head_dim ** (-0.5)

    # Host-side weight prep: fold softmax scale into W_q, fuse K/V, transpose
    # so the kernel computes y = x @ W.
    wq_t = (wq * scale).T                            # (C, C)
    wkv_t = jnp.concatenate([wk.T, wv.T], axis=1)    # (C, 2C)
    wp_t = wp.T                                      # (C, C)
    bp_2d = bp.reshape(1, C)

    call = _build_attention_call(B, Nv, Nt, C, num_heads)
    x, attn_flat = call(vfeat, tfeat, wq_t, wkv_t, wp_t, bp_2d)
    # Free, layout-preserving reshape back to the module's attn layout.
    attn = attn_flat.reshape(B, num_heads, Nt, Nv)
    return x, attn


def attention_reference(vfeat, tfeat, wq, wk, wv, wp, bp, *, num_heads):
    """Pure-JAX reference mirroring the PyTorch forward (f32, HIGHEST precision)."""
    B, Nv, C = vfeat.shape
    Nt = tfeat.shape[1]
    hd = C // num_heads
    scale = hd ** (-0.5)
    hp = jax.lax.Precision.HIGHEST
    q = jnp.einsum("btc,oc->bto", tfeat, wq, precision=hp)
    k = jnp.einsum("bvc,oc->bvo", vfeat, wk, precision=hp)
    v = jnp.einsum("bvc,oc->bvo", vfeat, wv, precision=hp)
    q = q.reshape(B, Nt, num_heads, hd).transpose(0, 2, 1, 3)
    k = k.reshape(B, Nv, num_heads, hd).transpose(0, 2, 1, 3)
    v = v.reshape(B, Nv, num_heads, hd).transpose(0, 2, 1, 3)
    attn = jnp.einsum("bhqd,bhkd->bhqk", q, k, precision=hp) * scale
    attn = jax.nn.softmax(attn, axis=-1)
    x = jnp.einsum("bhqk,bhkd->bhqd", attn, v, precision=hp)
    x = x.transpose(0, 2, 1, 3).reshape(B, Nt, C)
    x = jnp.einsum("btc,oc->bto", x, wp, precision=hp) + bp
    return x, attn


if __name__ == "__main__":
    B, Nv, Nt, C, H = 2, 16, 8, 32, 8

    key = jax.random.PRNGKey(0)
    k_vf, k_tf, k_wq, k_wk, k_wv, k_wp, k_bp = jax.random.split(key, 7)

    vfeat = jax.random.normal(k_vf, (B, Nv, C), dtype=jnp.float32)
    tfeat = jax.random.normal(k_tf, (B, Nt, C), dtype=jnp.float32)

    # Deterministic parameter init (PyTorch Linear weight layout: (out, in)).
    # qkv_bias=False -> no bias on query/key/value; proj has a bias.
    wq = jax.random.normal(k_wq, (C, C), dtype=jnp.float32) * 0.05
    wk = jax.random.normal(k_wk, (C, C), dtype=jnp.float32) * 0.05
    wv = jax.random.normal(k_wv, (C, C), dtype=jnp.float32) * 0.05
    wp = jax.random.normal(k_wp, (C, C), dtype=jnp.float32) * 0.05
    bp = jax.random.normal(k_bp, (C,), dtype=jnp.float32) * 0.05

    x_out, attn_out = attention_pallas(vfeat, tfeat, wq, wk, wv, wp, bp, num_heads=H)
    jax.block_until_ready((x_out, attn_out))

    x_exp, attn_exp = attention_reference(vfeat, tfeat, wq, wk, wv, wp, bp, num_heads=H)

    # Exact-divide softmax: probability rows sum to 1.
    assert jnp.allclose(jnp.sum(attn_out, axis=-1), 1.0, atol=1e-5), "attn rows != 1"
    # Tolerance covers MXU-vs-XLA matmul rounding only (no approximations left).
    assert jnp.allclose(x_out, x_exp, atol=3e-3, rtol=3e-3), "x mismatch"
    assert jnp.allclose(attn_out, attn_exp, atol=3e-3, rtol=3e-3), "attn mismatch"

    print("KERNEL_OK")
</pallas_src>

<mosaic_0001>
module attributes {stable_mosaic.version = 11 : i64} {
  func.func @_attention_kernel(%arg0: i32, %arg1: i32, %arg2: memref<1x16x32xf32, #tpu.memory_space<vmem>>, %arg3: memref<1x8x32xf32, #tpu.memory_space<vmem>>, %arg4: memref<32x32xf32, #tpu.memory_space<vmem>>, %arg5: memref<32x64xf32, #tpu.memory_space<vmem>>, %arg6: memref<32x32xf32, #tpu.memory_space<vmem>>, %arg7: memref<1x32xf32, #tpu.memory_space<vmem>>, %arg8: memref<1x8x32xf32, #tpu.memory_space<vmem>>, %arg9: memref<1x8x128xf32, #tpu.memory_space<vmem>>, %arg10: memref<8x16x4xf32, #tpu.memory_space<vmem>>, %arg11: memref<8x16x4xf32, #tpu.memory_space<vmem>>) attributes {dimension_semantics = [#tpu.dimension_semantics<parallel>, #tpu.dimension_semantics<arbitrary>], iteration_bounds = array<i64: 2, 1>, scalar_prefetch = 0 : i64, scratch_operands = 2 : i64, tpu.core_type = #tpu.core_type<tc>, window_params = [{transform_indices = @transform_0, window_bounds = array<i64: 1, 16, 32>}, {transform_indices = @transform_1, window_bounds = array<i64: 1, 8, 32>}, {pipeline_mode = #tpu.pipeline_mode<synchronous>, transform_indices = @transform_2, window_bounds = array<i64: 32, 32>}, {pipeline_mode = #tpu.pipeline_mode<synchronous>, transform_indices = @transform_3, window_bounds = array<i64: 32, 64>}, {pipeline_mode = #tpu.pipeline_mode<synchronous>, transform_indices = @transform_4, window_bounds = array<i64: 32, 32>}, {pipeline_mode = #tpu.pipeline_mode<synchronous>, transform_indices = @transform_5, window_bounds = array<i64: 1, 32>}, {transform_indices = @transform_6, window_bounds = array<i64: 1, 8, 32>}, {transform_indices = @transform_7, window_bounds = array<i64: 1, 8, 128>}]} {
    %c0_i32 = arith.constant 0 : i32
    %0 = arith.cmpi eq, %arg1, %c0_i32 : i32
    %1 = arith.extui %0 : i1 to i32
    %c0_i32_0 = arith.constant 0 : i32
    %2 = arith.cmpi ne, %1, %c0_i32_0 : i32
    scf.if %2 {
      %c0_26 = arith.constant 0 : index
      %c0_27 = arith.constant 0 : index
      %c0_28 = arith.constant 0 : index
      %36 = vector.load %arg2[%c0_26, %c0_27, %c0_28] : memref<1x16x32xf32, #tpu.memory_space<vmem>>, vector<1x16x32xf32>
      %37 = vector.shape_cast %36 : vector<1x16x32xf32> to vector<16x32xf32>
      %c0_29 = arith.constant 0 : index
      %c0_30 = arith.constant 0 : index
      %38 = vector.load %arg5[%c0_29, %c0_30] : memref<32x64xf32, #tpu.memory_space<vmem>>, vector<32x64xf32>
      %cst_31 = arith.constant dense<0.000000e+00> : vector<16x64xf32>
      %39 = tpu.matmul %37, %38, %cst_31 {dimension_numbers = #tpu.dot_dimension_numbers<[1], [0], [0], [1], [0, 0, 1, 1], [], []>} : vector<16x32xf32>, vector<32x64xf32>, vector<16x64xf32> -> vector<16x64xf32>
      %40 = vector.extract_strided_slice %39 {offsets = [0, 0], sizes = [16, 32], strides = [1, 1]} : vector<16x64xf32> to vector<16x32xf32>
      %41 = vector.shape_cast %40 : vector<16x32xf32> to vector<16x8x4xf32>
      %42 = vector.extract_strided_slice %39 {offsets = [0, 32], sizes = [16, 32], strides = [1, 1]} : vector<16x64xf32> to vector<16x32xf32>
      %43 = vector.shape_cast %42 : vector<16x32xf32> to vector<16x8x4xf32>
      %44 = tpu.transpose %41, [1, 0, 2] : vector<16x8x4xf32> -> vector<8x16x4xf32>
      %c0_32 = arith.constant 0 : index
      %c0_33 = arith.constant 0 : index
      %c0_34 = arith.constant 0 : index
      %45 = vector.load %arg10[%c0_32, %c0_33, %c0_34] : memref<8x16x4xf32, #tpu.memory_space<vmem>>, vector<8x16x4xf32>
      tpu.vector_store %arg10[%c0_32, %c0_33, %c0_34], %44 {strides = array<i32>} : memref<8x16x4xf32, #tpu.memory_space<vmem>>, vector<8x16x4xf32>,
      %46 = tpu.transpose %43, [1, 0, 2] : vector<16x8x4xf32> -> vector<8x16x4xf32>
      %c0_35 = arith.constant 0 : index
      %c0_36 = arith.constant 0 : index
      %c0_37 = arith.constant 0 : index
      %47 = vector.load %arg11[%c0_35, %c0_36, %c0_37] : memref<8x16x4xf32, #tpu.memory_space<vmem>>, vector<8x16x4xf32>
      tpu.vector_store %arg11[%c0_35, %c0_36, %c0_37], %46 {strides = array<i32>} : memref<8x16x4xf32, #tpu.memory_space<vmem>>, vector<8x16x4xf32>,
    } else {
    }
    %c0 = arith.constant 0 : index
    %c0_1 = arith.constant 0 : index
    %c0_2 = arith.constant 0 : index
    %3 = vector.load %arg3[%c0, %c0_1, %c0_2] : memref<1x8x32xf32, #tpu.memory_space<vmem>>, vector<1x8x32xf32>
    %4 = vector.shape_cast %3 : vector<1x8x32xf32> to vector<8x32xf32>
    %c0_3 = arith.constant 0 : index
    %c0_4 = arith.constant 0 : index
    %5 = vector.load %arg4[%c0_3, %c0_4] : memref<32x32xf32, #tpu.memory_space<vmem>>, vector<32x32xf32>
    %cst = arith.constant dense<0.000000e+00> : vector<8x32xf32>
    %6 = tpu.matmul %4, %5, %cst {dimension_numbers = #tpu.dot_dimension_numbers<[1], [0], [0], [1], [0, 0, 1, 1], [], []>} : vector<8x32xf32>, vector<32x32xf32>, vector<8x32xf32> -> vector<8x32xf32>
    %7 = vector.shape_cast %6 : vector<8x32xf32> to vector<8x8x4xf32>
    %8 = tpu.transpose %7, [1, 0, 2] : vector<8x8x4xf32> -> vector<8x8x4xf32>
    %c0_5 = arith.constant 0 : index
    %c0_6 = arith.constant 0 : index
    %c0_7 = arith.constant 0 : index
    %9 = vector.load %arg10[%c0_5, %c0_6, %c0_7] : memref<8x16x4xf32, #tpu.memory_space<vmem>>, vector<8x16x4xf32>
    %c0_8 = arith.constant 0 : index
    %c0_9 = arith.constant 0 : index
    %c0_10 = arith.constant 0 : index
    %10 = vector.load %arg11[%c0_8, %c0_9, %c0_10] : memref<8x16x4xf32, #tpu.memory_space<vmem>>, vector<8x16x4xf32>
    "tpu.trace_start"() <{level = 10 : i32, message = "hqd,hkd->hqk"}> : () -> ()
    %cst_11 = arith.constant dense<0.000000e+00> : vector<8x8x16xf32>
    %11 = tpu.matmul %8, %9, %cst_11 {dimension_numbers = #tpu.dot_dimension_numbers<[2], [2], [1], [1], [0, 0, 0, 1, 1, 1], [0], [0]>} : vector<8x8x4xf32>, vector<8x16x4xf32>, vector<8x8x16xf32> -> vector<8x8x16xf32>
    "tpu.trace_stop"() : () -> ()
    %cst_12 = arith.constant dense<0xFF800000> : vector<8x8xf32>
    %12 = vector.multi_reduction <maximumf>, %11, %cst_12 [2] : vector<8x8x16xf32> to vector<8x8xf32>
    %13 = vector.shape_cast %12 : vector<8x8xf32> to vector<8x8x1xf32>
    %14 = vector.broadcast %13 : vector<8x8x1xf32> to vector<8x8x16xf32>
    %15 = arith.subf %11, %14 : vector<8x8x16xf32>
    %16 = math.exp %15 : vector<8x8x16xf32>
    %cst_13 = arith.constant dense<0.000000e+00> : vector<8x8xf32>
    %17 = vector.multi_reduction <add>, %16, %cst_13 [2] : vector<8x8x16xf32> to vector<8x8xf32>
    %18 = vector.shape_cast %17 : vector<8x8xf32> to vector<8x8x1xf32>
    %19 = vector.broadcast %18 : vector<8x8x1xf32> to vector<8x8x16xf32>
    %20 = arith.divf %16, %19 : vector<8x8x16xf32>
    %21 = vector.shape_cast %20 : vector<8x8x16xf32> to vector<8x128xf32>
    %c0_14 = arith.constant 0 : index
    %c0_15 = arith.constant 0 : index
    %c0_16 = arith.constant 0 : index
    %22 = vector.load %arg9[%c0_14, %c0_15, %c0_16] : memref<1x8x128xf32, #tpu.memory_space<vmem>>, vector<1x8x128xf32>
    %23 = vector.shape_cast %22 : vector<1x8x128xf32> to vector<8x128xf32>
    %24 = vector.shape_cast %21 : vector<8x128xf32> to vector<1x8x128xf32>
    tpu.vector_store %arg9[%c0_14, %c0_15, %c0_16], %24 {strides = array<i32>} : memref<1x8x128xf32, #tpu.memory_space<vmem>>, vector<1x8x128xf32>,
    "tpu.trace_start"() <{level = 10 : i32, message = "hqk,hkd->hqd"}> : () -> ()
    %cst_17 = arith.constant dense<0.000000e+00> : vector<8x8x4xf32>
    %25 = tpu.matmul %20, %10, %cst_17 {dimension_numbers = #tpu.dot_dimension_numbers<[2], [1], [1], [2], [0, 0, 0, 1, 1, 2], [0], [0]>} : vector<8x8x16xf32>, vector<8x16x4xf32>, vector<8x8x4xf32> -> vector<8x8x4xf32>
    "tpu.trace_stop"() : () -> ()
    %26 = tpu.transpose %25, [1, 0, 2] : vector<8x8x4xf32> -> vector<8x8x4xf32>
    %27 = vector.shape_cast %26 : vector<8x8x4xf32> to vector<8x32xf32>
    %c0_18 = arith.constant 0 : index
    %c0_19 = arith.constant 0 : index
    %28 = vector.load %arg6[%c0_18, %c0_19] : memref<32x32xf32, #tpu.memory_space<vmem>>, vector<32x32xf32>
    %cst_20 = arith.constant dense<0.000000e+00> : vector<8x32xf32>
    %29 = tpu.matmul %27, %28, %cst_20 {dimension_numbers = #tpu.dot_dimension_numbers<[1], [0], [0], [1], [0, 0, 1, 1], [], []>} : vector<8x32xf32>, vector<32x32xf32>, vector<8x32xf32> -> vector<8x32xf32>
    %c0_21 = arith.constant 0 : index
    %c0_22 = arith.constant 0 : index
    %30 = vector.load %arg7[%c0_21, %c0_22] : memref<1x32xf32, #tpu.memory_space<vmem>>, vector<1x32xf32>
    %31 = vector.broadcast %30 : vector<1x32xf32> to vector<8x32xf32>
    %32 = arith.addf %29, %31 : vector<8x32xf32>
    %c0_23 = arith.constant 0 : index
    %c0_24 = arith.constant 0 : index
    %c0_25 = arith.constant 0 : index
    %33 = vector.load %arg8[%c0_23, %c0_24, %c0_25] : memref<1x8x32xf32, #tpu.memory_space<vmem>>, vector<1x8x32xf32>
    %34 = vector.shape_cast %33 : vector<1x8x32xf32> to vector<8x32xf32>
    %35 = vector.shape_cast %32 : vector<8x32xf32> to vector<1x8x32xf32>
    tpu.vector_store %arg8[%c0_23, %c0_24, %c0_25], %35 {strides = array<i32>} : memref<1x8x32xf32, #tpu.memory_space<vmem>>, vector<1x8x32xf32>,
    return
  }
  func.func @transform_0(%arg0: i32, %arg1: i32) -> (i32, i32, i32) {
    %c0_i32 = arith.constant 0 : i32
    %c0_i32_0 = arith.constant 0 : i32
    %c0_i32_1 = arith.constant 0 : i32
    return %arg0, %c0_i32, %c0_i32_0 : i32, i32, i32
  }
  func.func @transform_1(%arg0: i32, %arg1: i32) -> (i32, i32, i32) {
    %c0_i32 = arith.constant 0 : i32
    %c0_i32_0 = arith.constant 0 : i32
    return %arg0, %arg1, %c0_i32 : i32, i32, i32
  }
  func.func @transform_2(%arg0: i32, %arg1: i32) -> (i32, i32) {
    %c0_i32 = arith.constant 0 : i32
    %c0_i32_0 = arith.constant 0 : i32
    %c0_i32_1 = arith.constant 0 : i32
    return %c0_i32, %c0_i32_0 : i32, i32
  }
  func.func @transform_3(%arg0: i32, %arg1: i32) -> (i32, i32) {
    %c0_i32 = arith.constant 0 : i32
    %c0_i32_0 = arith.constant 0 : i32
    %c0_i32_1 = arith.constant 0 : i32
    return %c0_i32, %c0_i32_0 : i32, i32
  }
  func.func @transform_4(%arg0: i32, %arg1: i32) -> (i32, i32) {
    %c0_i32 = arith.constant 0 : i32
    %c0_i32_0 = arith.constant 0 : i32
    %c0_i32_1 = arith.constant 0 : i32
    return %c0_i32, %c0_i32_0 : i32, i32
  }
  func.func @transform_5(%arg0: i32, %arg1: i32) -> (i32, i32) {
    %c0_i32 = arith.constant 0 : i32
    %c0_i32_0 = arith.constant 0 : i32
    %c0_i32_1 = arith.constant 0 : i32
    return %c0_i32, %c0_i32_0 : i32, i32
  }
  func.func @transform_6(%arg0: i32, %arg1: i32) -> (i32, i32, i32) {
    %c0_i32 = arith.constant 0 : i32
    %c0_i32_0 = arith.constant 0 : i32
    return %arg0, %arg1, %c0_i32 : i32, i32, i32
  }
  func.func @transform_7(%arg0: i32, %arg1: i32) -> (i32, i32, i32) {
    %c0_i32 = arith.constant 0 : i32
    %c0_i32_0 = arith.constant 0 : i32
    return %arg0, %c0_i32, %arg1 : i32, i32, i32
  }
}

</mosaic_0001>

<bundles_post_ra>
// kernel: attention_pallas.1
= control target key start
LH: loop header
LB: loop body
LE: loop exit
PB: predicated region body
PF: predicated region fallthrough
CT: control target
= control target key end

     0   :  { %13 = vsyncpa [#allocation5], 0  ;;  %s5492_s0 = inlined_call_operand.vmem [shape: f32[2,16,32], index: 0, kind: input, shape index: {}]   ;;  %s5493_s1 = inlined_call_operand.vmem [shape: f32[2,8,32], index: 1, kind: input, shape index: {}]   ;;  %s5494_s2 = inlined_call_operand.vmem [shape: f32[32,32], index: 2, kind: input, shape index: {}]   ;;  %s5495_s3 = inlined_call_operand.vmem [shape: f32[32,64], index: 3, kind: input, shape index: {}]   ;;  %s5496_s4 = inlined_call_operand.vmem [shape: f32[32,32], index: 4, kind: input, shape index: {}]   ;;  %s5497_s5 = inlined_call_operand.vmem [shape: f32[1,32], index: 5, kind: input, shape index: {}]   ;;  %s5498_s6 = inlined_call_operand.hbm [shape: f32[2,8,32], index: 6, kind: output, shape index: {0}]   ;;  %s5499_s7 = inlined_call_operand.vmem [shape: f32[2,8,128], index: 7, kind: output, shape index: {1}]  }
   0x1   :  { %15 = vsyncpa [#allocation5 + $0x1], 0  ;;  %s4708_s24 = smov 0   ;;  %s4710_s25 = smov 0  }
   0x2   :  { %s4712_s26 = smov 0   ;;  %s4714_s27 = smov 0  }
   0x3   :  { %s4716_s28 = smov 0   ;;  %s4718_s29 = smov 0  }
   0x4 LB: > { %s4067_s30 = sadd.s32 4294967295, %s4641_s29   ;;  %s4068_s8 = sadd.s32 4294967294, %s4641_s29   ;;  %s4641_s29 = sphi %s4718_s29, %s21_s29   ;;  %s4637_s28 = sphi %s4716_s28, %s5508_s28   ;;  %s4633_s27 = sphi %s4714_s27, %s5507_s27   ;;  %s4629_s26 = sphi %s4712_s26, %s5506_s26   ;;  %s4625_s25 = sphi %s4710_s25, %s5505_s25   ;;  %s4621_s24 = sphi %s4708_s24, %s5504_s24  }
   0x5   : > { %s33_s9 = sadd.s32 1, %s4637_s28  ;;  %s180_s10 = sadd.s32 1, %s4629_s26 }
   0x6   : > { %p35_p0 = scmp.ge.s32.totalorder %s33_s9, 2  ;;  %p190_p1 = scmp.ne.s32.totalorder %s4629_s26, %s4625_s25 }
   0x7   : > { %p191_p2 = scmp.eq.s32.totalorder %s4067_s30, 1  ;;  %p196_p3 = scmp.ne.s32.totalorder %s4625_s25, %s4621_s24 }
   0x8   : > { %s5510_s9 = smov (%p35_p0, %s33_s9), 0  ;;  %p197_p5 = scmp.eq.s32.totalorder %s4068_s8, 1 }
   0x9   : > { %p4748_p4 = por %p191_p2, %p190_p1  ;;  %s175_s12 = ssub.s32 %s4637_s28, %s5510_s9 }
   0xa   : > { %p4071_p6 = scmp.ge.s32.totalorder %s4641_s29, 1  ;;  %p178_p7 = scmp.eq.s32.totalorder %s175_s12, 0 }
   0xb   : > { %p4755_p8 = por %p197_p5, %p196_p3  ;;  %p273_p9 = scmp.lt.s32.totalorder %s4641_s29, 3 }
   0xc   : > { %s4761_s14 = scalar_select %p178_p7, %s4629_s26, %s180_s10  }
   0xd   : > { %p274_p10 = pnand %p4071_p6, %p273_p9 }
   0xe   : > { %v344_v0 = vld [vmem:[%s5495_s3] sm:$0xff] (!%p274_p10)  ;;  %v345_v1 = vld [vmem:[%s5495_s3 + $0x8] sm:$0xff] (!%p274_p10)  ;;  %v346_v2 = vld [vmem:[%s5495_s3 + $0x10] sm:$0xff] (!%p274_p10)  ;;  %p319_p11 = scmp.lt.s32.totalorder (!%p274_p10), %s4633_s27, 1  ;;  %v4643_v5 = vmov (!%p274_p10), 0.0|0.0   ;;  %vm4644_vm0 = vmmov (!%p274_p10), 0   ;;  %v479_v23 = vlaneseq (!%p274_p10) }
   0xf   : > { %277 = sbr.rel (%p274_p10) target bundleno = 1605 (0x645), region = 44  ;;  %v4376_v3 = vpack.c.bf16 (!%p274_p10), %v345_v1, %v344_v0  ;;  %v347_v4 = vld [vmem:[%s5495_s3 + $0x18] sm:$0xff] (!%p274_p10)  ;;  %4384 = vmatprep.subr.bf16.mxu1 (!%p274_p10), %v4643_v5  ;;  %v1644_v6 = vld [vmem:[%s5494_s2] sm:$0xff] (!%p274_p10)  ;;  %v1645_v7 = vld [vmem:[%s5494_s2 + $0x8] sm:$0xff] (!%p274_p10)  ;;  %v4645_v12 = vmov (!%p274_p10), 0.0   ;;  %vm348_vm1 = vcmask (!%p274_p10), 261120  }
  0x10   : > { %v4380_v8 = vpack.c.bf16 (!%p274_p10), %v347_v4, %v346_v2  ;;  %v4385_v9 = vpack.c.bf16 (!%p274_p10), %v1645_v7, %v1644_v6  ;;  %v1646_v10 = vld [vmem:[%s5494_s2 + $0x10] sm:$0xff] (!%p274_p10)  ;;  %v1647_v11 = vld [vmem:[%s5494_s2 + $0x18] sm:$0xff] (!%p274_p10)  ;;  %4250 = vmatprep.mubr.msk.f32.mxu1 (!%p274_p10), %vm4644_vm0, %v4645_v12  ;;  %s4646_s15 = smov (!%p274_p10), 120   ;;  %s4647_s16 = smov (!%p274_p10), 124   ;;  %v4654_v21 = vmov (!%p274_p10), 1983009808  }
  0x11   : > { %4377 = vmatprep.subr.bf16.mxu0 (!%p274_p10), %v4376_v3  ;;  %v4388_v13 = vpack.c.bf16 (!%p274_p10), %v1647_v11, %v1646_v10  ;;  %s4648_s17 = smov (!%p274_p10), 116   ;;  %s4649_s18 = smov (!%p274_p10), 112   ;;  %v477_v22 = vunpack.c.l.s4 (!%p274_p10), %v4654_v21  ;;  %v4655_v24 = vmov (!%p274_p10), 1934713408   ;;  %v480_v27 = vshrl.u32 (!%p274_p10), %v479_v23, 7 }
  0x12   : > { %4379 = vmatpush3.bf16.msra.mxu0 (!%p274_p10), %v4376_v3  ;;  %4386 = vmatpush3.bf16.msra.mxu1 (!%p274_p10), %v4385_v9  ;;  %s4651_s21 = smov (!%p274_p10), 104   ;;  %s4652_s22 = smov (!%p274_p10), 100   ;;  %v541_v25 = vunpack.c.l.s4 (!%p274_p10), %v4655_v24  ;;  %vm1338_vm2 = vcmask (!%p274_p10), 31744   ;;  %vm2681_vm4 = vcmask (!%p274_p10), 130048   ;;  %vm3832_vm5 = vcmask (!%p274_p10), 64512  }
  0x13   : > { %4381 = vmatprep.subr.bf16.mxu0 (!%p274_p10), %v4380_v8  ;;  %4387 = vmatprep.subr.bf16.mxu1 (!%p274_p10), %v4643_v5  ;;  %v478_v26 = vunpack.c.0.s8 (!%p274_p10), %v477_v22  ;;  %vm5007_vm3 = vmpackc.low (!%p274_p10), %vm1338_vm2, %vm1338_vm2  ;;  %s4666_s30 = smov (!%p274_p10), 80   ;;  %vm3834_vm6 = vcmask (!%p274_p10), 97280   ;;  %vm3837_vm7 = vcmask (!%p274_p10), 162816   ;;  %vm3839_vm8 = vcmask (!%p274_p10), 195584  }
  0x14   : > { %v542_v30 = vunpack.c.0.s8 (!%p274_p10), %v541_v25  ;;  %vm3841_vm9 = vcmask (!%p274_p10), 228352   ;;  %vm2936_vm10 = vcmask (!%p274_p10), 392192   ;;  %vm2938_vm11 = vcmask (!%p274_p10), 523264  }
  0x15   : > { %v4842_v31 = vsub.s32 (!%p274_p10), %v478_v26, %v480_v27  ;;  %vm2940_vm12 = vcmask (!%p274_p10), 654336   ;;  %vm2942_vm13 = vcmask (!%p274_p10), 785408   ;;  %vm2944_vm14 = vcmask (!%p274_p10), 916480  }
  0x16   : > { %s4784_s12 = scalar_select %p319_p11, %s4633_s27, 1  ;;  %4383 = vmatpush3.bf16.msra.mxu0 %v4380_v8  ;;  %4389 = vmatpush3.bf16.msra.mxu1 %v4388_v13  ;;  %v4853_v38 = vsub.s32 %v542_v30, %v480_v27 }
  0x17   : > { %4390 = vmatprep.subr.bf16.mxu0 %v4643_v5  ;;  %4394 = vmatprep.subr.bf16.mxu1 %v4643_v5 }
  0x18   : > { %s4166_s19 = sshll.u32 %s4784_s12, 4  ;;  %s4075_s20 = sshll.u32 %s4784_s12, 3 }
  0x19   : > { %s323_s23 = scalar_lea.vmem %s5492_s0, %s4166_s19  ;;  %s330_s10 = scalar_lea.vmem %s5493_s1, %s4075_s20 }
  0x1a   : > { %v342_v14 = vld [vmem:[%s323_s23] sm:$0xff]  ;;  %v343_v15 = vld [vmem:[%s323_s23 + $0x8] sm:$0xff]  ;;  %s4650_s19 = smov 108   ;;  %s4653_s23 = smov 96  }
  0x1b   : > { %4239 = vmatprep.mubr.msk.f32.mxu0 %vm348_vm1, %v342_v14  ;;  %v1643_v16 = vld [vmem:[%s330_s10] sm:$0xff]  ;;  %s4659_s10 = smov 20   ;;  %s337_s8 = scalar_lea.vmem %s5499_s7, %s4075_s20 }
  0x1c   : > { %4240 = vmatmul.mubr.msk.f32.vlgmr.msra.gmra.mrb[0].mxu0 %vm348_vm1, %v343_v15  ;;  %4251 = vmatmul.mubr.msk.f32.vlgmr.msra.gmra.mrb[0].mxu1 %vm348_vm1, %v1643_v16 }
  0x1d   : > { %4257 = vmatprep.mubr.msk.f32.mxu0 %vm4644_vm0, %v4645_v12  ;;  %4264 = vmatprep.mubr.msk.f32.mxu1 %vm4644_vm0, %v4645_v12 }
  0xef   : > { %v4241_v17 = vpop.f32.mrb[0].mxu0  ;;  %v4814_v18 = vpop.f32.mrb[0].mxu1 }
  0xf0   : > { %440 = vrot.lane.b32.xlu1 %v4241_v17, %s4646_s15  ;;  %434 = vrot.lane.b32.xlu0 %v4241_v17, %s4647_s16  ;;  %v4816_v19 = vpop.f32.mrb[1].mxu0  ;;  %v4252_v20 = vpop.f32.mrb[1].mxu1 }
  0xf4   : > { %446 = vrot.lane.b32.xlu1 %v4241_v17, %s4648_s17  ;;  %432 = vrot.lane.b32.xlu0 %v4816_v19, %s4647_s16 }
  0xf8   : > { %438 = vrot.lane.b32.xlu1 %v4816_v19, %s4646_s15  ;;  %1723 = vrot.lane.b32.xlu0 %v4814_v18, %s4647_s16  ;;  %s4656_s16 = smov 8  }
  0xfc   : > { %452 = vrot.lane.b32.xlu1 %v4241_v17, %s4649_s18  ;;  %444 = vrot.lane.b32.xlu0 %v4816_v19, %s4648_s17 }
 0x100   : > { %458 = vrot.lane.b32.xlu1 %v4241_v17, %s4650_s19  ;;  %450 = vrot.lane.b32.xlu0 %v4816_v19, %s4649_s18 }
 0x104   : > { %464 = vrot.lane.b32.xlu1 %v4241_v17, %s4651_s21  ;;  %456 = vrot.lane.b32.xlu0 %v4816_v19, %s4650_s19 }
 0x108   : > { %470 = vrot.lane.b32.xlu1 %v4241_v17, %s4652_s22  ;;  %462 = vrot.lane.b32.xlu0 %v4816_v19, %s4651_s21 }
 0x10c   : > { %1726 = vrot.lane.b32.xlu1 %v4814_v18, %s4646_s15  ;;  %468 = vrot.lane.b32.xlu0 %v4816_v19, %s4652_s22  ;;  %s4660_s15 = smov 16  }
 0x110   : > { %1732 = vrot.lane.b32.xlu1 %v4814_v18, %s4649_s18  ;;  %1729 = vrot.lane.b32.xlu0 %v4814_v18, %s4648_s17  ;;  %s4657_s17 = smov 4  }
 0x114   : > { %1738 = vrot.lane.b32.xlu1 %v4814_v18, %s4651_s21  ;;  %1735 = vrot.lane.b32.xlu0 %v4814_v18, %s4650_s19  ;;  %s4658_s19 = smov 12   ;;  %s4664_s21 = smov 64  }
 0x118   : > { %748 = vrot.lane.b32.xlu1 %v4241_v17, %s4653_s23  ;;  %1741 = vrot.lane.b32.xlu0 %v4814_v18, %s4652_s22  ;;  %s4665_s22 = smov 48  }
 0x11c   : > { %746 = vrot.lane.b32.xlu0 %v4816_v19, %s4653_s23 }
 0x162   : > { %v4838_v28 = vpop.permute.xlu1 %440  ;;  %v4840_v29 = vpop.permute.xlu0 %434 }
 0x163   : > { %v610_v32 = vcombine.low %v4241_v17, %v4838_v28  ;;  %v611_v33 = vcombine.high %v4241_v17, %v4838_v28 }
 0x165   : > { %v618_v39 = vrot.slane %v610_v32, %v4842_v31  ;;  %v625_v40 = vrot.slane %v611_v33, %v4842_v31 }
 0x166   : > { %v4846_v34 = vpop.permute.xlu1 %446  ;;  %v433_v35 = vpop.permute.xlu0 %432 }
 0x167   : > { %v626_v36 = vcombine.low %v4840_v29, %v4846_v34  ;;  %v627_v37 = vcombine.high %v4840_v29, %v4846_v34  ;;  %750 = vrot.lane.b32.xlu1 %v433_v35, %s4653_s23 }
 0x169   : > { %v634_v41 = vrot.slane %v626_v36, %v4842_v31  ;;  %v641_v42 = vrot.slane %v627_v37, %v4842_v31 }
 0x16a   : > { %v4859_v43 = vpop.permute.xlu1 %438  ;;  %v4861_v44 = vpop.permute.xlu0 %1723 }
 0x16b   : > { %v674_v45 = vcombine.low %v618_v39, %v634_v41  ;;  %v675_v46 = vcombine.high %v618_v39, %v634_v41  ;;  %v690_v47 = vcombine.low %v625_v40, %v641_v42  ;;  %v691_v48 = vcombine.high %v625_v40, %v641_v42 }
 0x16c   : > { %v474_v53 = vcombine.low %v4816_v19, %v4859_v43  ;;  %v475_v54 = vcombine.high %v4816_v19, %v4859_v43 }
 0x16d   : > { %v682_v49 = vrot.slane %v674_v45, %v4853_v38  ;;  %v689_v50 = vrot.slane %v675_v46, %v4853_v38  ;;  %v698_v51 = vrot.slane %v690_v47, %v4853_v38  ;;  %v705_v52 = vrot.slane %v691_v48, %v4853_v38 }
 0x16e   : > { %v4871_v55 = vpop.permute.xlu1 %452  ;;  %v4873_v56 = vpop.permute.xlu0 %444  ;;  %v482_v3 = vrot.slane %v474_v53, %v4842_v31  ;;  %v489_v4 = vrot.slane %v475_v54, %v4842_v31 }
 0x16f   : > { %v4087_v57 = vcombine.low %v682_v49, %v689_v50  ;;  %v4089_v58 = vcombine.high %v682_v49, %v689_v50  ;;  %v4091_v59 = vcombine.low %v698_v51, %v705_v52  ;;  %v4093_v60 = vcombine.high %v698_v51, %v705_v52 }
 0x170   : > { %v490_v61 = vcombine.low %v433_v35, %v4873_v56  ;;  %v491_v62 = vcombine.high %v433_v35, %v4873_v56 }
 0x171   : > { %v1210_v63 = vrot.slane %v4087_v57, %v4842_v31  ;;  %v1226_v0 = vrot.slane %v4089_v58, %v4842_v31  ;;  %v1242_v1 = vrot.slane %v4091_v59, %v4842_v31  ;;  %v1258_v2 = vrot.slane %v4093_v60, %v4842_v31 }
 0x172   : > { %v498_v6 = vrot.slane %v490_v61, %v4842_v31  ;;  %v505_v7 = vrot.slane %v491_v62, %v4842_v31  ;;  %v4885_v8 = vpop.permute.xlu1 %458  ;;  %v4887_v9 = vpop.permute.xlu0 %450 }
 0x173   : > { %v1266_v10 = vcombine.low %v1210_v63, %v1226_v0  ;;  %v1267_v11 = vcombine.high %v1210_v63, %v1226_v0  ;;  %v1298_v13 = vcombine.low %v1242_v1, %v1258_v2  ;;  %v1299_v14 = vcombine.high %v1242_v1, %v1258_v2 }
 0x174   : > { %v538_v15 = vcombine.low %v482_v3, %v498_v6  ;;  %v539_v16 = vcombine.high %v482_v3, %v498_v6  ;;  %v554_v17 = vcombine.low %v489_v4, %v505_v7  ;;  %v555_v19 = vcombine.high %v489_v4, %v505_v7 }
 0x175   : > { %v1274_v20 = vrot.slane %v1266_v10, %v4853_v38  ;;  %v1281_v21 = vrot.slane %v1267_v11, %v4853_v38  ;;  %v1306_v22 = vrot.slane %v1298_v13, %v4853_v38  ;;  %v1313_v23 = vrot.slane %v1299_v14, %v4853_v38 }
 0x176   : > { %v546_v24 = vrot.slane %v538_v15, %v4853_v38  ;;  %v553_v25 = vrot.slane %v539_v16, %v4853_v38  ;;  %v562_v26 = vrot.slane %v554_v17, %v4853_v38  ;;  %v569_v27 = vrot.slane %v555_v19, %v4853_v38  ;;  %v4897_v30 = vpop.permute.xlu1 %464  ;;  %v4899_v32 = vpop.permute.xlu0 %456 }
 0x177   : > { %v1330_v33 = vcombine.low %v1274_v20, %v1306_v22  ;;  %v1331_v35 = vcombine.high %v1274_v20, %v1306_v22  ;;  %v1332_v36 = vcombine.low %v1281_v21, %v1313_v23  ;;  %v1333_v37 = vcombine.high %v1281_v21, %v1313_v23 }
 0x178   : > { %v4079_v39 = vcombine.low %v546_v24, %v553_v25  ;;  %v4081_v40 = vcombine.high %v546_v24, %v553_v25  ;;  %v4083_v41 = vcombine.low %v562_v26, %v569_v27  ;;  %v4085_v42 = vcombine.high %v562_v26, %v569_v27 }
 0x179   : > { %1340 = vst.msk [vmem:[#allocation2 + $0x8] sm:$0xff] %vm1338_vm2, %v1330_v33  ;;  %1342 = vst.msk [vmem:[#allocation2 + $0x18] sm:$0xff] %vm1338_vm2, %v1331_v35  ;;  %v642_v45 = vcombine.low %v4871_v55, %v4897_v30  ;;  %v643_v46 = vcombine.high %v4871_v55, %v4897_v30 }
 0x17a   : > { %1344 = vst.msk [vmem:[#allocation2 + $0x28] sm:$0xff] %vm1338_vm2, %v1332_v36  ;;  %1346 = vst.msk [vmem:[#allocation2 + $0x38] sm:$0xff] %vm1338_vm2, %v1333_v37  ;;  %v1074_v47 = vrot.slane %v4079_v39, %v4842_v31  ;;  %v1090_v48 = vrot.slane %v4081_v40, %v4842_v31  ;;  %v1106_v49 = vrot.slane %v4083_v41, %v4842_v31  ;;  %v4913_v51 = vpop.permute.xlu1 %470  ;;  %v4915_v52 = vpop.permute.xlu0 %462 }
 0x17b   : > { %v1122_v50 = vrot.slane %v4085_v42, %v4842_v31  ;;  %v650_v53 = vrot.slane %v642_v45, %v4842_v31  ;;  %v657_v54 = vrot.slane %v643_v46, %v4842_v31  ;;  %v658_v57 = vcombine.low %v4885_v8, %v4913_v51 }
 0x17c   : > { %v659_v58 = vcombine.high %v4885_v8, %v4913_v51  ;;  %v1130_v59 = vcombine.low %v1074_v47, %v1090_v48  ;;  %v1131_v60 = vcombine.high %v1074_v47, %v1090_v48  ;;  %v506_v1 = vcombine.low %v4887_v9, %v4915_v52 }
 0x17d   : > { %v1162_v61 = vcombine.low %v1106_v49, %v1122_v50  ;;  %v1163_v62 = vcombine.high %v1106_v49, %v1122_v50  ;;  %v666_v63 = vrot.slane %v658_v57, %v4842_v31  ;;  %v507_v2 = vcombine.high %v4887_v9, %v4915_v52 }
 0x17e   : > { %v673_v0 = vrot.slane %v659_v58, %v4842_v31  ;;  %v1138_v3 = vrot.slane %v1130_v59, %v4853_v38  ;;  %v1145_v4 = vrot.slane %v1131_v60, %v4853_v38  ;;  %v1727_v10 = vpop.permute.xlu1 %1726  ;;  %v4933_v11 = vpop.permute.xlu0 %468  ;;  %v514_v26 = vrot.slane %v506_v1, %v4842_v31 }
 0x17f   : > { %v1170_v6 = vrot.slane %v1162_v61, %v4853_v38  ;;  %v1177_v7 = vrot.slane %v1163_v62, %v4853_v38  ;;  %v706_v13 = vcombine.low %v650_v53, %v666_v63  ;;  %v707_v14 = vcombine.high %v650_v53, %v666_v63 }
 0x180   : > { %v722_v15 = vcombine.low %v657_v54, %v673_v0  ;;  %v723_v16 = vcombine.high %v657_v54, %v673_v0  ;;  %v521_v27 = vrot.slane %v507_v2, %v4842_v31  ;;  %v1744_v33 = vcombine.low %v4814_v18, %v1727_v10 }
 0x181   : > { %v1194_v17 = vcombine.low %v1138_v3, %v1170_v6  ;;  %v1195_v19 = vcombine.high %v1138_v3, %v1170_v6  ;;  %v1196_v20 = vcombine.low %v1145_v4, %v1177_v7  ;;  %v1197_v21 = vcombine.high %v1145_v4, %v1177_v7 }
 0x182   : > { %v714_v22 = vrot.slane %v706_v13, %v4853_v38  ;;  %v721_v23 = vrot.slane %v707_v14, %v4853_v38  ;;  %v730_v24 = vrot.slane %v722_v15, %v4853_v38  ;;  %v737_v25 = vrot.slane %v723_v16, %v4853_v38  ;;  %v1730_v41 = vpop.permute.xlu0 %1729  ;;  %v4953_v48 = vpop.permute.xlu1 %1732 }
 0x183   : > { %1339 = vst.msk [vmem:[#allocation2] sm:$0xff] %vm1338_vm2, %v1194_v17  ;;  %1341 = vst.msk [vmem:[#allocation2 + $0x10] sm:$0xff] %vm1338_vm2, %v1195_v19  ;;  %v1745_v35 = vcombine.high %v4814_v18, %v1727_v10  ;;  %v1752_v42 = vrot.slane %v1744_v33, %v4842_v31  ;;  %v522_v46 = vcombine.low %v4899_v32, %v4933_v11 }
 0x184   : > { %1343 = vst.msk [vmem:[#allocation2 + $0x20] sm:$0xff] %vm1338_vm2, %v1196_v20  ;;  %1345 = vst.msk [vmem:[#allocation2 + $0x30] sm:$0xff] %vm1338_vm2, %v1197_v21  ;;  %v4088_v36 = vcombine.low %v714_v22, %v721_v23  ;;  %v4090_v37 = vcombine.high %v714_v22, %v721_v23  ;;  %v4092_v39 = vcombine.low %v730_v24, %v737_v25 }
 0x185   : > { %v4094_v40 = vcombine.high %v730_v24, %v737_v25  ;;  %v1759_v45 = vrot.slane %v1745_v35, %v4842_v31  ;;  %v523_v47 = vcombine.high %v4899_v32, %v4933_v11  ;;  %v530_v54 = vrot.slane %v522_v46, %v4842_v31 }
 0x186   : > { %v1217_v49 = vrot.slane %v4088_v36, %v4842_v31  ;;  %v1233_v18 = vrot.slane %v4090_v37, %v4842_v31  ;;  %v1249_v50 = vrot.slane %v4092_v39, %v4842_v31  ;;  %v1760_v58 = vcombine.low %v4861_v44, %v1730_v41  ;;  %v4971_v16 = vpop.permute.xlu1 %1738  ;;  %v1736_v36 = vpop.permute.xlu0 %1735 }
 0x187   : > { %v1265_v53 = vrot.slane %v4094_v40, %v4842_v31  ;;  %v537_v57 = vrot.slane %v523_v47, %v4842_v31  ;;  %v1761_v59 = vcombine.high %v4861_v44, %v1730_v41  ;;  %v570_v0 = vcombine.low %v514_v26, %v530_v54 }
 0x188   : > { %v1282_v60 = vcombine.low %v1217_v49, %v1233_v18  ;;  %v1283_v61 = vcombine.high %v1217_v49, %v1233_v18  ;;  %v571_v1 = vcombine.high %v514_v26, %v530_v54  ;;  %v1768_v26 = vrot.slane %v1760_v58, %v4842_v31 }
 0x189   : > { %v1314_v62 = vcombine.low %v1249_v50, %v1265_v53  ;;  %v1315_v63 = vcombine.high %v1249_v50, %v1265_v53  ;;  %v586_v2 = vcombine.low %v521_v27, %v537_v57  ;;  %v587_v3 = vcombine.high %v521_v27, %v537_v57 }
 0x18a   : > { %v1290_v4 = vrot.slane %v1282_v60, %v4853_v38  ;;  %v1297_v6 = vrot.slane %v1283_v61, %v4853_v38  ;;  %v578_v13 = vrot.slane %v570_v0, %v4853_v38  ;;  %v585_v44 = vrot.slane %v571_v1, %v4853_v38 }
 0x18b   : > { %v1322_v7 = vrot.slane %v1314_v62, %v4853_v38  ;;  %v1329_v10 = vrot.slane %v1315_v63, %v4853_v38  ;;  %v594_v14 = vrot.slane %v586_v2, %v4853_v38  ;;  %v601_v15 = vrot.slane %v587_v3, %v4853_v38  ;;  %v1742_v3 = vpop.permute.xlu0 %1741 }
 0x18c   : > { %v4080_v22 = vcombine.low %v578_v13, %v585_v44  ;;  %v4082_v23 = vcombine.high %v578_v13, %v585_v44  ;;  %v1775_v27 = vrot.slane %v1761_v59, %v4842_v31  ;;  %v1776_v33 = vcombine.low %v4953_v48, %v4971_v16 }
 0x18d   : > { %v1334_v17 = vcombine.low %v1290_v4, %v1322_v7  ;;  %v1335_v19 = vcombine.high %v1290_v4, %v1322_v7  ;;  %v1336_v20 = vcombine.low %v1297_v6, %v1329_v10  ;;  %v1337_v21 = vcombine.high %v1297_v6, %v1329_v10 }
 0x18e   : > { %v4084_v24 = vcombine.low %v594_v14, %v601_v15  ;;  %v4086_v25 = vcombine.high %v594_v14, %v601_v15  ;;  %v1777_v35 = vcombine.high %v4953_v48, %v4971_v16  ;;  %v1081_v37 = vrot.slane %v4080_v22, %v4842_v31  ;;  %v2016_v16 = vld [vmem:[#allocation2] sm:$0xff] }
 0x18f   : > { %1348 = vst.msk [vmem:[#allocation2 + $0x48] sm:$0xff] %vm1338_vm2, %v1334_v17  ;;  %1350 = vst.msk [vmem:[#allocation2 + $0x58] sm:$0xff] %vm1338_vm2, %v1335_v19  ;;  %v1097_v39 = vrot.slane %v4082_v23, %v4842_v31  ;;  %v1808_v46 = vcombine.low %v1752_v42, %v1768_v26  ;;  %v1809_v47 = vcombine.high %v1752_v42, %v1768_v26  ;;  %v2018_v17 = vld [vmem:[#allocation2 + $0x10] sm:$0xff] }
 0x190   : > { %1352 = vst.msk [vmem:[#allocation2 + $0x68] sm:$0xff] %vm1338_vm2, %v1336_v20  ;;  %1354 = vst.msk [vmem:[#allocation2 + $0x78] sm:$0xff] %vm1338_vm2, %v1337_v21  ;;  %v1113_v40 = vrot.slane %v4084_v24, %v4842_v31  ;;  %v1129_v41 = vrot.slane %v4086_v25, %v4842_v31  ;;  %v1824_v49 = vcombine.low %v1759_v45, %v1775_v27  ;;  %v2017_v25 = vld [vmem:[#allocation2 + $0x8] sm:$0xff] }
 0x191   : > { %v1825_v18 = vcombine.high %v1759_v45, %v1775_v27  ;;  %v1146_v50 = vcombine.low %v1081_v37, %v1097_v39  ;;  %v1147_v53 = vcombine.high %v1081_v37, %v1097_v39  ;;  %v1816_v58 = vrot.slane %v1808_v46, %v4853_v38  ;;  %v2019_v27 = vld [vmem:[#allocation2 + $0x18] sm:$0xff] }
 0x192   : > { %v1178_v54 = vcombine.low %v1113_v40, %v1129_v41  ;;  %v1179_v57 = vcombine.high %v1113_v40, %v1129_v41  ;;  %v1823_v48 = vrot.slane %v1809_v47, %v4853_v38  ;;  %v1832_v59 = vrot.slane %v1824_v49, %v4853_v38 }
 0x193   : > { %v1839_v60 = vrot.slane %v1825_v18, %v4853_v38  ;;  %v1154_v61 = vrot.slane %v1146_v50, %v4853_v38  ;;  %v1161_v62 = vrot.slane %v1147_v53, %v4853_v38  ;;  %v1792_v19 = vcombine.low %v1736_v36, %v1742_v3 }
 0x194   : > { %v1186_v42 = vrot.slane %v1178_v54, %v4853_v38  ;;  %v1193_v45 = vrot.slane %v1179_v57, %v4853_v38  ;;  %v4112_v63 = vcombine.low %v1816_v58, %v1823_v48  ;;  %v4114_v0 = vcombine.high %v1816_v58, %v1823_v48  ;;  %v2020_v48 = vld [vmem:[#allocation2 + $0x20] sm:$0xff] }
 0x195   : > { %v4116_v1 = vcombine.low %v1832_v59, %v1839_v60  ;;  %v4118_v2 = vcombine.high %v1832_v59, %v1839_v60  ;;  %v1793_v20 = vcombine.high %v1736_v36, %v1742_v3  ;;  %v1784_v23 = vrot.slane %v1776_v33, %v4842_v31  ;;  %v2022_v59 = vld [vmem:[#allocation2 + $0x30] sm:$0xff] }
 0x196   : > { %v1198_v4 = vcombine.low %v1154_v61, %v1186_v42  ;;  %v1199_v6 = vcombine.high %v1154_v61, %v1186_v42  ;;  %v1200_v7 = vcombine.low %v1161_v62, %v1193_v45  ;;  %v1201_v10 = vcombine.high %v1161_v62, %v1193_v45 }
 0x197   : > { %v1888_v13 = vrot.slane %v4112_v63, %v4842_v31  ;;  %v1904_v44 = vrot.slane %v4114_v0, %v4842_v31  ;;  %v1920_v14 = vrot.slane %v4116_v1, %v4842_v31  ;;  %v1936_v15 = vrot.slane %v4118_v2, %v4842_v31  ;;  %v2021_v0 = vld [vmem:[#allocation2 + $0x28] sm:$0xff]  ;;  %v2023_v1 = vld [vmem:[#allocation2 + $0x38] sm:$0xff] }
 0x198   : > { %1347 = vst.msk [vmem:[#allocation2 + $0x40] sm:$0xff] %vm1338_vm2, %v1198_v4  ;;  %1349 = vst.msk [vmem:[#allocation2 + $0x50] sm:$0xff] %vm1338_vm2, %v1199_v6  ;;  %v1791_v24 = vrot.slane %v1777_v35, %v4842_v31  ;;  %v1800_v37 = vrot.slane %v1792_v19, %v4842_v31  ;;  %v1807_v39 = vrot.slane %v1793_v20, %v4842_v31 }
 0x199   : > { %1351 = vst.msk [vmem:[#allocation2 + $0x60] sm:$0xff] %vm1338_vm2, %v1200_v7  ;;  %1353 = vst.msk [vmem:[#allocation2 + $0x70] sm:$0xff] %vm1338_vm2, %v1201_v10  ;;  %v1944_v21 = vcombine.low %v1888_v13, %v1904_v44  ;;  %v1976_v22 = vcombine.low %v1920_v14, %v1936_v15  ;;  %v4391_v40 = vpack.c.bf16 %v2017_v25, %v2016_v16 }
 0x19a   : > { %v4395_v36 = vpack.c.bf16 %v2019_v27, %v2018_v17  ;;  %v1840_v46 = vcombine.low %v1784_v23, %v1800_v37  ;;  %v1841_v35 = vcombine.high %v1784_v23, %v1800_v37  ;;  %v1856_v47 = vcombine.low %v1791_v24, %v1807_v39 }
 0x19b   : > { %v1952_v41 = vrot.slane %v1944_v21, %v4853_v38  ;;  %v1984_v33 = vrot.slane %v1976_v22, %v4853_v38  ;;  %v1857_v49 = vcombine.high %v1791_v24, %v1807_v39  ;;  %4393 = vmatpush3.bf16.xpose.msk.msra.mxu0 %vm5007_vm3, %v4391_v40  ;;  %v1945_v60 = vcombine.high %v1888_v13, %v1904_v44  ;;  %v2025_v21 = vld [vmem:[#allocation2 + $0x48] sm:$0xff]  ;;  %v2027_v22 = vld [vmem:[#allocation2 + $0x58] sm:$0xff] }
 0x19c   : > { %4397 = vmatpush3.bf16.xpose.msk.msra.mxu1 %vm5007_vm3, %v4395_v36  ;;  %4398 = vmatprep.subr.bf16.mxu0 %v4643_v5  ;;  %v1848_v18 = vrot.slane %v1840_v46, %v4853_v38  ;;  %v1855_v50 = vrot.slane %v1841_v35, %v4853_v38  ;;  %v1864_v53 = vrot.slane %v1856_v47, %v4853_v38  ;;  %v2029_v46 = vld [vmem:[#allocation2 + $0x68] sm:$0xff]  ;;  %v2031_v35 = vld [vmem:[#allocation2 + $0x78] sm:$0xff] }
 0x19d   : > { %v1871_v54 = vrot.slane %v1857_v49, %v4853_v38  ;;  %4402 = vmatprep.subr.bf16.mxu1 %v4643_v5  ;;  %v2008_v57 = vcombine.low %v1952_v41, %v1984_v33  ;;  %v2009_v58 = vcombine.high %v1952_v41, %v1984_v33  ;;  %v1977_v61 = vcombine.high %v1920_v14, %v1936_v15 }
 0x19e   : > { %v4113_v62 = vcombine.low %v1848_v18, %v1855_v50  ;;  %v4115_v42 = vcombine.high %v1848_v18, %v1855_v50  ;;  %v4399_v2 = vpack.c.bf16 %v2021_v0, %v2020_v48  ;;  %v4403_v3 = vpack.c.bf16 %v2023_v1, %v2022_v59 }
 0x19f   : > { %v4117_v45 = vcombine.low %v1864_v53, %v1871_v54  ;;  %v4119_v63 = vcombine.high %v1864_v53, %v1871_v54  ;;  %v1959_v6 = vrot.slane %v1945_v60, %v4853_v38  ;;  %v1991_v7 = vrot.slane %v1977_v61, %v4853_v38  ;;  %v2024_v14 = vld [vmem:[#allocation2 + $0x40] sm:$0xff]  ;;  %v2026_v15 = vld [vmem:[#allocation2 + $0x50] sm:$0xff] }
 0x1a0   : > { %v1895_v4 = vrot.slane %v4113_v62, %v4842_v31  ;;  %v1911_v10 = vrot.slane %v4115_v42, %v4842_v31  ;;  %v4407_v23 = vpack.c.bf16 %v2025_v21, %v2024_v14  ;;  %v4411_v24 = vpack.c.bf16 %v2027_v22, %v2026_v15  ;;  %v2028_v37 = vld [vmem:[#allocation2 + $0x60] sm:$0xff]  ;;  %v2030_v39 = vld [vmem:[#allocation2 + $0x70] sm:$0xff] }
 0x1a1   : > { %v1927_v13 = vrot.slane %v4117_v45, %v4842_v31  ;;  %v1943_v44 = vrot.slane %v4119_v63, %v4842_v31  ;;  %v2010_v19 = vcombine.low %v1959_v6, %v1991_v7  ;;  %v2011_v20 = vcombine.high %v1959_v6, %v1991_v7 }
 0x1a2   : > { %4258 = vmatmul.mubr.msk.f32.vlgmr.msra.gmra.mrb[2].mxu0 %vm1338_vm2, %v2008_v57  ;;  %v1960_v16 = vcombine.low %v1895_v4, %v1911_v10  ;;  %v1961_v40 = vcombine.high %v1895_v4, %v1911_v10  ;;  %v4415_v47 = vpack.c.bf16 %v2029_v46, %v2028_v37  ;;  %v4419_v49 = vpack.c.bf16 %v2031_v35, %v2030_v39 }
 0x1a3   : > { %4265 = vmatmul.mubr.msk.f32.vlgmr.msra.gmra.mrb[2].mxu1 %vm1338_vm2, %v2009_v58  ;;  %4401 = vmatpush3.bf16.xpose.msk.msra.mxu0 %vm5007_vm3, %v4399_v2  ;;  %v1992_v17 = vcombine.low %v1927_v13, %v1943_v44  ;;  %v1993_v36 = vcombine.high %v1927_v13, %v1943_v44 }
 0x1a4   : > { %4405 = vmatpush3.bf16.xpose.msk.msra.mxu1 %vm5007_vm3, %v4403_v3  ;;  %4271 = vmatprep.mubr.msk.f32.mxu0 %vm4644_vm0, %v4645_v12  ;;  %v1968_v25 = vrot.slane %v1960_v16, %v4853_v38  ;;  %v1975_v18 = vrot.slane %v1961_v40, %v4853_v38 }
 0x1a5   : > { %4278 = vmatprep.mubr.msk.f32.mxu1 %vm4644_vm0, %v4645_v12  ;;  %4406 = vmatprep.subr.bf16.mxu0 %v4643_v5  ;;  %v2000_v27 = vrot.slane %v1992_v17, %v4853_v38  ;;  %v2007_v50 = vrot.slane %v1993_v36, %v4853_v38 }
 0x1a6   : > { %4410 = vmatprep.subr.bf16.mxu1 %v4643_v5 }
 0x1a7   : > { %v2012_v41 = vcombine.low %v1968_v25, %v2000_v27  ;;  %v2013_v33 = vcombine.high %v1968_v25, %v2000_v27  ;;  %v2014_v53 = vcombine.low %v1975_v18, %v2007_v50  ;;  %v2015_v54 = vcombine.high %v1975_v18, %v2007_v50 }
 0x1aa   : > { %4272 = vmatmul.mubr.msk.f32.vlgmr.msra.gmra.mrb[4].mxu0 %vm1338_vm2, %v2010_v19 }
 0x1ab   : > { %4279 = vmatmul.mubr.msk.f32.vlgmr.msra.gmra.mrb[4].mxu1 %vm1338_vm2, %v2011_v20  ;;  %4409 = vmatpush3.bf16.xpose.msk.msra.mxu0 %vm5007_vm3, %v4407_v23 }
 0x1ac   : > { %4413 = vmatpush3.bf16.xpose.msk.msra.mxu1 %vm5007_vm3, %v4411_v24  ;;  %4285 = vmatprep.mubr.msk.f32.mxu0 %vm4644_vm0, %v4645_v12 }
 0x1ad   : > { %4292 = vmatprep.mubr.msk.f32.mxu1 %vm4644_vm0, %v4645_v12  ;;  %4414 = vmatprep.subr.bf16.mxu0 %v4643_v5 }
 0x1ae   : > { %4418 = vmatprep.subr.bf16.mxu1 %v4643_v5 }
 0x1b2   : > { %4286 = vmatmul.mubr.msk.f32.vlgmr.msra.gmra.mrb[6].mxu0 %vm1338_vm2, %v2012_v41 }
 0x1b3   : > { %4293 = vmatmul.mubr.msk.f32.vlgmr.msra.gmra.mrb[6].mxu1 %vm1338_vm2, %v2013_v33  ;;  %4417 = vmatpush3.bf16.xpose.msk.msra.mxu0 %vm5007_vm3, %v4415_v47 }
 0x1b4   : > { %4421 = vmatpush3.bf16.xpose.msk.msra.mxu1 %vm5007_vm3, %v4419_v49  ;;  %4299 = vmatprep.mubr.msk.f32.mxu0 %vm4644_vm0, %v4645_v12 }
 0x1b5   : > { %4306 = vmatprep.mubr.msk.f32.mxu1 %vm4644_vm0, %v4645_v12  ;;  %4422 = vmatprep.subr.bf16.mxu1 %v4643_v5 }
 0x1b6   : > { %4428 = vmatprep.subr.bf16.mxu0 %v4643_v5 }
 0x1ba   : > { %4300 = vmatmul.mubr.msk.f32.vlgmr.msra.gmra.mrb[8].mxu0 %vm1338_vm2, %v2014_v53 }
 0x1bb   : > { %4307 = vmatmul.mubr.msk.f32.vlgmr.msra.gmra.mrb[8].mxu1 %vm1338_vm2, %v2015_v54  ;;  %4327 = vmatprep.mubr.msk.f32.mxu0 %vm4644_vm0, %v4645_v12 }
 0x1bc   : > { %4313 = vmatprep.mubr.msk.f32.mxu1 %vm4644_vm0, %v4645_v12 }
 0x275   : > { %v2124_v26 = vpop.f32.mrb[2].mxu0 }
 0x276   : > { %v2203_v57 = vpop.f32.mrb[2].mxu1  ;;  %v4259_v58 = vpop.f32.mrb[3].mxu0  ;;  %v2682_v48 = vsel %vm2681_vm4, %v2124_v26, -inf }
 0x277   : > { %v4266_v59 = vpop.f32.mrb[3].mxu1  ;;  %v2685_v60 = vsel %vm2681_vm4, %v2203_v57, -inf  ;;  %2683 = vmax.xlane.f32.xlu1 %v2682_v48 }
 0x278   : > { %2686 = vmax.xlane.f32.xlu0 %v2685_v60 }
 0x27d   : > { %v5079_v61 = vpop.f32.mrb[4].mxu0 }
 0x27e   : > { %v2361_v62 = vpop.f32.mrb[4].mxu1  ;;  %v4273_v42 = vpop.f32.mrb[5].mxu0  ;;  %v2688_v0 = vsel %vm2681_vm4, %v5079_v61, -inf }
 0x27f   : > { %v4280_v45 = vpop.f32.mrb[5].mxu1  ;;  %v2691_v63 = vsel %vm2681_vm4, %v2361_v62, -inf  ;;  %2689 = vmax.xlane.f32.xlu0 %v2688_v0 }
 0x280   : > { %2692 = vmax.xlane.f32.xlu1 %v2691_v63 }
 0x285   : > { %v2440_v1 = vpop.f32.mrb[6].mxu0 }
 0x286   : > { %v5084_v2 = vpop.f32.mrb[6].mxu1  ;;  %v4287_v3 = vpop.f32.mrb[7].mxu0  ;;  %v2694_v7 = vsel %vm2681_vm4, %v2440_v1, -inf }
 0x287   : > { %v4294_v4 = vpop.f32.mrb[7].mxu1  ;;  %v2697_v6 = vsel %vm2681_vm4, %v5084_v2, -inf  ;;  %2695 = vmax.xlane.f32.xlu0 %v2694_v7 }
 0x288   : > { %2698 = vmax.xlane.f32.xlu1 %v2697_v6 }
 0x28d   : > { %v2598_v10 = vpop.f32.mrb[8].mxu0 }
 0x28e   : > { %v5089_v13 = vpop.f32.mrb[8].mxu1  ;;  %v4301_v44 = vpop.f32.mrb[9].mxu0  ;;  %v2700_v15 = vsel %vm2681_vm4, %v2598_v10, -inf }
 0x28f   : > { %v4308_v14 = vpop.f32.mrb[9].mxu1  ;;  %2701 = vmax.xlane.f32.xlu0 %v2700_v15 }
 0x299   : > { %754 = vrot.lane.b32.xlu1 %v4859_v43, %s4653_s23  ;;  %v747_v43 = vpop.permute.xlu0 %746 }
 0x29d   : > { %758 = vrot.lane.b32.xlu1 %v4873_v56, %s4653_s23 }
 0x2a1   : > { %764 = vrot.lane.b32.xlu1 %v4871_v55, %s4653_s23 }
 0x2a5   : > { %766 = vrot.lane.b32.xlu1 %v4899_v32, %s4653_s23  ;;  %752 = vrot.lane.b32.xlu0 %v4840_v29, %s4653_s23  ;;  %v2703_v29 = vsel %vm2681_vm4, %v5089_v13, -inf }
 0x2a9   : > { %756 = vrot.lane.b32.xlu0 %v4838_v28, %s4653_s23  ;;  %v5118_v28 = vpop.permute.xlu1 %748 }
 0x2ad   : > { %760 = vrot.lane.b32.xlu0 %v4846_v34, %s4653_s23  ;;  %v751_v34 = vpop.permute.xlu1 %750 }
 0x2b1   : > { %762 = vrot.lane.b32.xlu0 %v4887_v9, %s4653_s23 }
 0x2b5   : > { %768 = vrot.lane.b32.xlu0 %v4885_v8, %s4653_s23 }
 0x2b9   : > { %772 = vrot.lane.b32.xlu0 %v4897_v30, %s4653_s23 }
 0x2bd   : > { %776 = vrot.lane.b32.xlu0 %v4913_v51, %s4653_s23 }
 0x2c9   : > { %2704 = vmax.xlane.f32.xlu1 %v2703_v29 }
 0x2da   : > { %770 = vrot.lane.b32.xlu1 %v4915_v52, %s4653_s23 }
 0x304   : > { %v2684_v55 = vpop.xlane.xlu1 %2683 }
 0x305   : > { %v2706_v56 = vsub.f32 %v2124_v26, %v2684_v55  ;;  %v2687_v8 = vpop.xlane.xlu0 %2686 }
 0x306   : > { %v2707_v9 = vsub.f32 %v2203_v57, %v2687_v8 }
 0x307   : > { %v2714_v32 = vmul.f32 1.442695, %v2706_v56 }
 0x308   : > { %v2716_v30 = vmul.f32 1.442695, %v2707_v9 }
 0x309   : > { %4531 = vpow2.f32 %v2714_v32 }
 0x30a   : > { %4533 = vpow2.f32 %v2716_v30 }
 0x30c   : > { %v5120_v19 = vpop.xlane.xlu0 %2689 }
 0x30d   : > { %v2693_v51 = vpop.xlane.xlu1 %2692 }
 0x30e   : > { %v2709_v16 = vsub.f32 %v2361_v62, %v2693_v51 }
 0x310   : > { %v2720_v17 = vmul.f32 1.442695, %v2709_v16 }
 0x312   : > { %4535 = vpow2.f32 %v2720_v17 }
 0x313   : > { %v5122_v20 = vpop.eup %4531 }
 0x314   : > { %v5124_v52 = vpop.eup %4533  ;;  %v2730_v21 = vsel %vm2681_vm4, %v5122_v20, 0.0  ;;  %v2696_v23 = vpop.xlane.xlu0 %2695 }
 0x315   : > { %v5128_v22 = vpop.xlane.xlu1 %2698  ;;  %2731 = vadd.xlane.f32.xlu1 %v2730_v21  ;;  %v2733_v24 = vsel %vm2681_vm4, %v5124_v52, 0.0  ;;  %v2710_v25 = vsub.f32 %v2440_v1, %v2696_v23 }
 0x316   : > { %2734 = vadd.xlane.f32.xlu0 %v2733_v24 }
 0x317   : > { %v2722_v27 = vmul.f32 1.442695, %v2710_v25 }
 0x319   : > { %v755_v37 = vpop.permute.xlu1 %754  ;;  %4537 = vpow2.f32 %v2722_v27 }
 0x31a   : > { %v794_v39 = vcombine.low %v747_v43, %v755_v37  ;;  %v795_v36 = vcombine.high %v747_v43, %v755_v37 }
 0x31c   : > { %v5132_v40 = vpop.eup %4535  ;;  %v2702_v33 = vpop.xlane.xlu0 %2701  ;;  %v802_v18 = vrot.slane %v794_v39, %v4842_v31  ;;  %v809_v50 = vrot.slane %v795_v36, %v4842_v31 }
 0x31d   : > { %v759_v41 = vpop.permute.xlu1 %758  ;;  %v2739_v46 = vsel %vm2681_vm4, %v5132_v40, 0.0  ;;  %v2712_v49 = vsub.f32 %v2598_v10, %v2702_v33 }
 0x31e   : > { %v810_v35 = vcombine.low %v751_v34, %v759_v41  ;;  %v811_v47 = vcombine.high %v751_v34, %v759_v41  ;;  %2740 = vadd.xlane.f32.xlu0 %v2739_v46 }
 0x31f   : > { %v2726_v26 = vmul.f32 1.442695, %v2712_v49 }
 0x320   : > { %v818_v53 = vrot.slane %v810_v35, %v4842_v31  ;;  %v825_v54 = vrot.slane %v811_v47, %v4842_v31  ;;  %v753_v57 = vpop.permute.xlu0 %752 }
 0x321   : > { %4539 = vpow2.f32 %v2726_v26 }
 0x322   : > { %v858_v58 = vcombine.low %v802_v18, %v818_v53  ;;  %v859_v48 = vcombine.high %v802_v18, %v818_v53  ;;  %v874_v59 = vcombine.low %v809_v50, %v825_v54  ;;  %v875_v60 = vcombine.high %v809_v50, %v825_v54 }
 0x323   : > { %v5144_v0 = vpop.eup %4537 }
 0x324   : > { %v866_v62 = vrot.slane %v858_v58, %v4853_v38  ;;  %v873_v42 = vrot.slane %v859_v48, %v4853_v38  ;;  %v882_v45 = vrot.slane %v874_v59, %v4853_v38  ;;  %v889_v63 = vrot.slane %v875_v60, %v4853_v38  ;;  %v757_v1 = vpop.permute.xlu0 %756 }
 0x325   : > { %v2742_v10 = vsel %vm2681_vm4, %v5144_v0, 0.0  ;;  %v930_v34 = vcombine.low %v5118_v28, %v757_v1  ;;  %v931_v43 = vcombine.high %v5118_v28, %v757_v1  ;;  %v2708_v58 = vsub.f32 %v5079_v61, %v5120_v19 }
 0x326   : > { %v4095_v3 = vcombine.low %v866_v62, %v873_v42  ;;  %v4097_v4 = vcombine.high %v866_v62, %v873_v42  ;;  %v4099_v6 = vcombine.low %v882_v45, %v889_v63  ;;  %v4101_v7 = vcombine.high %v882_v45, %v889_v63  ;;  %774 = vrot.lane.b32.xlu1 %v4933_v11, %s4653_s23 }
 0x327   : > { %2743 = vadd.xlane.f32.xlu0 %v2742_v10  ;;  %v938_v24 = vrot.slane %v930_v34, %v4842_v31  ;;  %v945_v28 = vrot.slane %v931_v43, %v4842_v31 }
 0x328   : > { %v1363_v44 = vrot.slane %v4095_v3, %v4842_v31  ;;  %v1379_v14 = vrot.slane %v4097_v4, %v4842_v31  ;;  %v1395_v15 = vrot.slane %v4099_v6, %v4842_v31  ;;  %v1411_v29 = vrot.slane %v4101_v7, %v4842_v31  ;;  %v761_v55 = vpop.permute.xlu0 %760  ;;  %v765_v7 = vpop.permute.xlu1 %764 }
 0x329   : > { %v946_v32 = vcombine.low %v753_v57, %v761_v55  ;;  %v947_v30 = vcombine.high %v753_v57, %v761_v55  ;;  %v2718_v4 = vmul.f32 1.442695, %v2708_v58  ;;  %v2711_v6 = vsub.f32 %v5084_v2, %v5128_v22 }
 0x32a   : > { %v1419_v56 = vcombine.low %v1363_v44, %v1379_v14  ;;  %v1420_v8 = vcombine.high %v1363_v44, %v1379_v14  ;;  %v1451_v11 = vcombine.low %v1395_v15, %v1411_v29  ;;  %v1452_v9 = vcombine.high %v1395_v15, %v1411_v29 }
 0x32b   : > { %v5160_v23 = vpop.eup %4539  ;;  %v954_v25 = vrot.slane %v946_v32, %v4842_v31  ;;  %v961_v27 = vrot.slane %v947_v30, %v4842_v31  ;;  %4541 = vpow2.f32 %v2718_v4 }
 0x32c   : > { %v1427_v51 = vrot.slane %v1419_v56, %v4853_v38  ;;  %v1434_v16 = vrot.slane %v1420_v8, %v4853_v38  ;;  %v1459_v17 = vrot.slane %v1451_v11, %v4853_v38  ;;  %v1466_v21 = vrot.slane %v1452_v9, %v4853_v38  ;;  %v5166_v37 = vpop.permute.xlu0 %762 }
 0x32d   : > { %v994_v46 = vcombine.low %v938_v24, %v954_v25  ;;  %v995_v35 = vcombine.high %v938_v24, %v954_v25  ;;  %v1010_v47 = vcombine.low %v945_v28, %v961_v27  ;;  %v1011_v49 = vcombine.high %v945_v28, %v961_v27 }
 0x32e   : > { %v1483_v39 = vcombine.low %v1427_v51, %v1459_v17  ;;  %v1484_v36 = vcombine.high %v1427_v51, %v1459_v17  ;;  %v1485_v41 = vcombine.low %v1434_v16, %v1466_v21  ;;  %v1486_v33 = vcombine.high %v1434_v16, %v1466_v21 }
 0x32f   : > { %v2748_v18 = vsel %vm2681_vm4, %v5160_v23, 0.0  ;;  %v1002_v50 = vrot.slane %v994_v46, %v4853_v38  ;;  %v1009_v53 = vrot.slane %v995_v35, %v4853_v38  ;;  %v1018_v54 = vrot.slane %v1010_v47, %v4853_v38 }
 0x330   : > { %1627 = vst.msk [vmem:[#allocation3] sm:$0xff] %vm1338_vm2, %v1483_v39  ;;  %1629 = vst.msk [vmem:[#allocation3 + $0x10] sm:$0xff] %vm1338_vm2, %v1484_v36  ;;  %v1025_v26 = vrot.slane %v1011_v49, %v4853_v38  ;;  %2749 = vadd.xlane.f32.xlu0 %v2748_v18  ;;  %v769_v57 = vpop.permute.xlu0 %768  ;;  %v2724_v8 = vmul.f32 1.442695, %v2711_v6 }
 0x331   : > { %1631 = vst.msk [vmem:[#allocation3 + $0x20] sm:$0xff] %vm1338_vm2, %v1485_v41  ;;  %1633 = vst.msk [vmem:[#allocation3 + $0x30] sm:$0xff] %vm1338_vm2, %v1486_v33  ;;  %v4103_v48 = vcombine.low %v1002_v50, %v1009_v53  ;;  %v4105_v59 = vcombine.high %v1002_v50, %v1009_v53 }
 0x332   : > { %v4107_v60 = vcombine.low %v1018_v54, %v1025_v26  ;;  %v4109_v62 = vcombine.high %v1018_v54, %v1025_v26  ;;  %4543 = vpow2.f32 %v2724_v8 }
 0x333   : > { %v1499_v42 = vrot.slane %v4103_v48, %v4842_v31  ;;  %v1515_v45 = vrot.slane %v4105_v59, %v4842_v31 }
 0x334   : > { %v1531_v63 = vrot.slane %v4107_v60, %v4842_v31  ;;  %v1547_v1 = vrot.slane %v4109_v62, %v4842_v31  ;;  %v773_v3 = vpop.permute.xlu0 %772 }
 0x335   : > { %v1555_v10 = vcombine.low %v1499_v42, %v1515_v45  ;;  %v1556_v61 = vcombine.high %v1499_v42, %v1515_v45  ;;  %v962_v14 = vcombine.low %v765_v7, %v773_v3  ;;  %v963_v15 = vcombine.high %v765_v7, %v773_v3  ;;  %v5202_v50 = vpop.eup %4541 }
 0x336   : > { %v1587_v19 = vcombine.low %v1531_v63, %v1547_v1  ;;  %v1588_v44 = vcombine.high %v1531_v63, %v1547_v1 }
 0x337   : > { %v1563_v29 = vrot.slane %v1555_v10, %v4853_v38  ;;  %v1570_v34 = vrot.slane %v1556_v61, %v4853_v38  ;;  %v970_v51 = vrot.slane %v962_v14, %v4842_v31  ;;  %v977_v16 = vrot.slane %v963_v15, %v4842_v31  ;;  %v2032_v18 = vld [vmem:[#allocation3] sm:$0xff] }
 0x338   : > { %v1595_v43 = vrot.slane %v1587_v19, %v4853_v38  ;;  %v1602_v55 = vrot.slane %v1588_v44, %v4853_v38  ;;  %v777_v56 = vpop.permute.xlu0 %776  ;;  %v2036_v48 = vld [vmem:[#allocation3 + $0x20] sm:$0xff]  ;;  %v2736_v61 = vsel %vm2681_vm4, %v5202_v50, 0.0 }
 0x339   : > { %v978_v11 = vcombine.low %v769_v57, %v777_v56  ;;  %v979_v2 = vcombine.high %v769_v57, %v777_v56 }
 0x33a   : > { %v1619_v22 = vcombine.low %v1563_v29, %v1595_v43  ;;  %v1620_v9 = vcombine.high %v1563_v29, %v1595_v43  ;;  %v1621_v32 = vcombine.low %v1570_v34, %v1602_v55  ;;  %v1622_v30 = vcombine.high %v1570_v34, %v1602_v55  ;;  %v767_v34 = vpop.permute.xlu1 %766 }
 0x33b   : > { %v986_v17 = vrot.slane %v978_v11, %v4842_v31  ;;  %v993_v21 = vrot.slane %v979_v2, %v4842_v31 }
 0x33c   : > { %1628 = vst.msk [vmem:[#allocation3 + $0x8] sm:$0xff] %vm1338_vm2, %v1619_v22  ;;  %1630 = vst.msk [vmem:[#allocation3 + $0x18] sm:$0xff] %vm1338_vm2, %v1620_v9  ;;  %v5213_v10 = vpop.eup %4543 }
 0x33d   : > { %1632 = vst.msk [vmem:[#allocation3 + $0x28] sm:$0xff] %vm1338_vm2, %v1621_v32  ;;  %1634 = vst.msk [vmem:[#allocation3 + $0x38] sm:$0xff] %vm1338_vm2, %v1622_v30  ;;  %v1026_v24 = vcombine.low %v970_v51, %v986_v17  ;;  %v1027_v28 = vcombine.high %v970_v51, %v986_v17  ;;  %v1042_v25 = vcombine.low %v977_v16, %v993_v21  ;;  %v2745_v29 = vsel %vm2681_vm4, %v5213_v10, 0.0 }
 0x33e   : > { %v1043_v27 = vcombine.high %v977_v16, %v993_v21 }
 0x33f   : > { %v1034_v39 = vrot.slane %v1026_v24, %v4853_v38  ;;  %v1041_v36 = vrot.slane %v1027_v28, %v4853_v38  ;;  %v1050_v41 = vrot.slane %v1042_v25, %v4853_v38 }
 0x340   : > { %v1057_v33 = vrot.slane %v1043_v27, %v4853_v38 }
 0x341   : > { %v4104_v46 = vcombine.low %v1034_v39, %v1041_v36  ;;  %v4106_v35 = vcombine.high %v1034_v39, %v1041_v36 }
 0x342   : > { %v4108_v47 = vcombine.low %v1050_v41, %v1057_v33  ;;  %v4110_v49 = vcombine.high %v1050_v41, %v1057_v33 }
 0x343   : > { %v1506_v53 = vrot.slane %v4104_v46, %v4842_v31  ;;  %v1522_v54 = vrot.slane %v4106_v35, %v4842_v31  ;;  %v2033_v58 = vld [vmem:[#allocation3 + $0x8] sm:$0xff]  ;;  %v2035_v33 = vld [vmem:[#allocation3 + $0x18] sm:$0xff] }
 0x344   : > { %v1538_v26 = vrot.slane %v4108_v47, %v4842_v31  ;;  %v1554_v57 = vrot.slane %v4110_v49, %v4842_v31  ;;  %v2037_v59 = vld [vmem:[#allocation3 + $0x28] sm:$0xff]  ;;  %v4423_v60 = vpack.c.bf16 %v2033_v58, %v2032_v18 }
 0x345   : > { %v4429_v62 = vpack.c.bf16 %v2037_v59, %v2036_v48  ;;  %v1571_v42 = vcombine.low %v1506_v53, %v1522_v54  ;;  %v1572_v45 = vcombine.high %v1506_v53, %v1522_v54  ;;  %v2034_v53 = vld [vmem:[#allocation3 + $0x10] sm:$0xff] }
 0x346   : > { %v1603_v63 = vcombine.low %v1538_v26, %v1554_v57  ;;  %v1604_v1 = vcombine.high %v1538_v26, %v1554_v57  ;;  %4424 = vmatpush3.bf16.msra.mxu1 %v4423_v60  ;;  %v4426_v48 = vpack.c.bf16 %v2035_v33, %v2034_v53  ;;  %v2039_v60 = vld [vmem:[#allocation3 + $0x38] sm:$0xff] }
 0x347   : > { %4430 = vmatpush3.bf16.msra.mxu0 %v4429_v62  ;;  %v1579_v3 = vrot.slane %v1571_v42, %v4853_v38  ;;  %v1586_v4 = vrot.slane %v1572_v45, %v4853_v38  ;;  %4425 = vmatprep.subr.bf16.mxu1 %v4643_v5 }
 0x348   : > { %v1611_v6 = vrot.slane %v1603_v63, %v4853_v38  ;;  %v1618_v7 = vrot.slane %v1604_v1, %v4853_v38  ;;  %4434 = vmatprep.subr.bf16.mxu0 %v4643_v5  ;;  %v2038_v1 = vld [vmem:[#allocation3 + $0x30] sm:$0xff] }
 0x34a   : > { %v1623_v19 = vcombine.low %v1579_v3, %v1611_v6  ;;  %v1624_v44 = vcombine.high %v1579_v3, %v1611_v6  ;;  %v1625_v14 = vcombine.low %v1586_v4, %v1618_v7  ;;  %v1626_v15 = vcombine.high %v1586_v4, %v1618_v7  ;;  %2737 = vadd.xlane.f32.xlu1 %v2736_v61 }
 0x34b   : > { %v4432_v6 = vpack.c.bf16 %v2039_v60, %v2038_v1 }
 0x34c   : > { %1636 = vst.msk [vmem:[#allocation3 + $0x48] sm:$0xff] %vm1338_vm2, %v1623_v19  ;;  %1638 = vst.msk [vmem:[#allocation3 + $0x58] sm:$0xff] %vm1338_vm2, %v1624_v44 }
 0x34d   : > { %1640 = vst.msk [vmem:[#allocation3 + $0x68] sm:$0xff] %vm1338_vm2, %v1625_v14  ;;  %1642 = vst.msk [vmem:[#allocation3 + $0x78] sm:$0xff] %vm1338_vm2, %v1626_v15 }
 0x34e   : > { %2746 = vadd.xlane.f32.xlu1 %v2745_v29 }
 0x354   : > { %v2047_v53 = vld [vmem:[#allocation3 + $0x78] sm:$0xff] }
 0x356   : > { %v2705_v43 = vpop.xlane.xlu1 %2704 }
 0x357   : > { %v2713_v55 = vsub.f32 %v5089_v13, %v2705_v43 }
 0x359   : > { %v2728_v56 = vmul.f32 1.442695, %v2713_v55 }
 0x35a   : > { %v771_v2 = vpop.permute.xlu1 %770 }
 0x35b   : > { %4545 = vpow2.f32 %v2728_v56  ;;  %v826_v32 = vcombine.low %v5166_v37, %v771_v2  ;;  %v827_v30 = vcombine.high %v5166_v37, %v771_v2 }
 0x35d   : > { %v834_v17 = vrot.slane %v826_v32, %v4842_v31  ;;  %v841_v21 = vrot.slane %v827_v30, %v4842_v31  ;;  %v2043_v32 = vld [vmem:[#allocation3 + $0x58] sm:$0xff] }
 0x365   : > { %v5225_v8 = vpop.eup %4545 }
 0x366   : > { %v2751_v11 = vsel %vm2681_vm4, %v5225_v8, 0.0 }
 0x367   : > { %2752 = vadd.xlane.f32.xlu1 %v2751_v11 }
 0x3a2   : > { %v2732_v22 = vpop.xlane.xlu1 %2731 }
 0x3a3   : > { %4547 = vrcp.f32 %v2732_v22  ;;  %v2735_v9 = vpop.xlane.xlu0 %2734 }
 0x3a4   : > { %4549 = vrcp.f32 %v2735_v9 }
 0x3a6   : > { %v775_v51 = vpop.permute.xlu1 %774 }
 0x3a7   : > { %v842_v16 = vcombine.low %v767_v34, %v775_v51  ;;  %v843_v13 = vcombine.high %v767_v34, %v775_v51 }
 0x3a9   : > { %v850_v24 = vrot.slane %v842_v16, %v4842_v31  ;;  %v857_v28 = vrot.slane %v843_v13, %v4842_v31 }
 0x3ab   : > { %v890_v25 = vcombine.low %v834_v17, %v850_v24  ;;  %v891_v27 = vcombine.high %v834_v17, %v850_v24  ;;  %v906_v39 = vcombine.low %v841_v21, %v857_v28  ;;  %v907_v36 = vcombine.high %v841_v21, %v857_v28  ;;  %v2741_v41 = vpop.xlane.xlu0 %2740 }
 0x3ac   : > { %4551 = vrcp.f32 %v2741_v41  ;;  %v2041_v41 = vld [vmem:[#allocation3 + $0x48] sm:$0xff] }
 0x3ad   : > { %v4548_v37 = vpop.eup %4547  ;;  %v898_v46 = vrot.slane %v890_v25, %v4853_v38  ;;  %v905_v35 = vrot.slane %v891_v27, %v4853_v38  ;;  %v914_v47 = vrot.slane %v906_v39, %v4853_v38  ;;  %v921_v49 = vrot.slane %v907_v36, %v4853_v38 }
 0x3ae   : > { %v5240_v18 = vmul.f32 %v4548_v37, %v5122_v20  ;;  %v4550_v54 = vpop.eup %4549 }
 0x3af   : > { %v4096_v26 = vcombine.low %v898_v46, %v905_v35  ;;  %v4098_v57 = vcombine.high %v898_v46, %v905_v35  ;;  %v4100_v58 = vcombine.low %v914_v47, %v921_v49  ;;  %v4102_v59 = vcombine.high %v914_v47, %v921_v49 }
 0x3b0   : > { %4314 = vmatmul.mubr.msk.f32.vlgmr.msra.gmra.mrb[10].mxu1 %vm2681_vm4, %v5240_v18  ;;  %v5250_v20 = vmul.f32 %v4550_v54, %v5124_v52 }
 0x3b1   : > { %v1370_v62 = vrot.slane %v4096_v26, %v4842_v31  ;;  %v1386_v42 = vrot.slane %v4098_v57, %v4842_v31  ;;  %v1402_v45 = vrot.slane %v4100_v58, %v4842_v31  ;;  %4427 = vmatpush3.bf16.msra.mxu1 %v4426_v48  ;;  %4320 = vmatprep.mubr.msk.f32.mxu1 %vm4644_vm0, %v4645_v12 }
 0x3b2   : > { %v1418_v63 = vrot.slane %v4102_v59, %v4842_v31  ;;  %4431 = vmatprep.subr.bf16.mxu1 %v4643_v5 }
 0x3b3   : > { %v1435_v3 = vcombine.low %v1370_v62, %v1386_v42  ;;  %v1436_v4 = vcombine.high %v1370_v62, %v1386_v42 }
 0x3b4   : > { %v1467_v7 = vcombine.low %v1402_v45, %v1418_v63  ;;  %v1468_v61 = vcombine.high %v1402_v45, %v1418_v63  ;;  %4321 = vmatmul.mubr.msk.f32.vlgmr.msra.gmra.mrb[12].mxu1 %vm2681_vm4, %v5250_v20  ;;  %v2744_v22 = vpop.xlane.xlu0 %2743 }
 0x3b5   : > { %v1443_v19 = vrot.slane %v1435_v3, %v4853_v38  ;;  %v1450_v44 = vrot.slane %v1436_v4, %v4853_v38  ;;  %4433 = vmatpush3.bf16.msra.mxu1 %v4432_v6  ;;  %4334 = vmatprep.mubr.msk.f32.mxu1 %vm4644_vm0, %v4645_v12  ;;  %4553 = vrcp.f32 %v2744_v22 }
 0x3b6   : > { %v4552_v52 = vpop.eup %4551  ;;  %v1475_v14 = vrot.slane %v1467_v7, %v4853_v38  ;;  %v1482_v15 = vrot.slane %v1468_v61, %v4853_v38  ;;  %4437 = vmatprep.subr.bf16.mxu1 %v4643_v5 }
 0x3b7   : > { %v2761_v29 = vmul.f32 %v4552_v52, %v5132_v40 }
 0x3b8   : > { %v1487_v34 = vcombine.low %v1443_v19, %v1475_v14  ;;  %v1488_v43 = vcombine.high %v1443_v19, %v1475_v14  ;;  %v1489_v55 = vcombine.low %v1450_v44, %v1482_v15  ;;  %v1490_v56 = vcombine.high %v1450_v44, %v1482_v15 }
 0x3b9   : > { %4335 = vmatmul.mubr.msk.f32.vlgmr.msra.gmra.mrb[14].mxu1 %vm2681_vm4, %v2761_v29  ;;  %v2786_v11 = vcombine.low %v5250_v20, %v2761_v29  ;;  %v2787_v2 = vcombine.high %v5250_v20, %v2761_v29 }
 0x3ba   : > { %1635 = vst.msk [vmem:[#allocation3 + $0x40] sm:$0xff] %vm1338_vm2, %v1487_v34  ;;  %1637 = vst.msk [vmem:[#allocation3 + $0x50] sm:$0xff] %vm1338_vm2, %v1488_v43  ;;  %4348 = vmatprep.mubr.msk.f32.mxu1 %vm4644_vm0, %v4645_v12 }
 0x3bb   : > { %1639 = vst.msk [vmem:[#allocation3 + $0x60] sm:$0xff] %vm1338_vm2, %v1489_v55  ;;  %1641 = vst.msk [vmem:[#allocation3 + $0x70] sm:$0xff] %vm1338_vm2, %v1490_v56  ;;  %v2794_v47 = vrot.slane %v2786_v11, %v4842_v31  ;;  %v2801_v57 = vrot.slane %v2787_v2, %v4842_v31 }
 0x3bd   : > { %v2750_v40 = vpop.xlane.xlu0 %2749 }
 0x3be   : > { %4555 = vrcp.f32 %v2750_v40 }
 0x3bf   : > { %v4554_v51 = vpop.eup %4553 }
 0x3c0   : > { %v2763_v13 = vmul.f32 %v4554_v51, %v5144_v0 }
 0x3c1   : > { %v2042_v9 = vld [vmem:[#allocation3 + $0x50] sm:$0xff]  ;;  %v2040_v27 = vld [vmem:[#allocation3 + $0x40] sm:$0xff] }
 0x3c2   : > { %v4438_v30 = vpack.c.bf16 %v2043_v32, %v2042_v9  ;;  %v4435_v33 = vpack.c.bf16 %v2041_v41, %v2040_v27  ;;  %v2044_v37 = vld [vmem:[#allocation3 + $0x60] sm:$0xff]  ;;  %v2046_v46 = vld [vmem:[#allocation3 + $0x70] sm:$0xff] }
 0x3c3   : > { %v4444_v58 = vpack.c.bf16 %v2047_v53, %v2046_v46 }
 0x3c4   : > { %4439 = vmatpush3.bf16.msra.mxu1 %v4438_v30 }
 0x3c5   : > { %4443 = vmatprep.subr.bf16.mxu1 %v4643_v5 }
 0x3c8   : > { %v4556_v16 = vpop.eup %4555 }
 0x3c9   : > { %v2767_v17 = vmul.f32 %v4556_v16, %v5160_v23 }
 0x3cb   : > { %v2802_v21 = vcombine.low %v2763_v13, %v2767_v17  ;;  %v2803_v24 = vcombine.high %v2763_v13, %v2767_v17 }
 0x3cd   : > { %v2810_v1 = vrot.slane %v2802_v21, %v4842_v31  ;;  %v2817_v4 = vrot.slane %v2803_v24, %v4842_v31 }
 0x3d7   : > { %v2738_v28 = vpop.xlane.xlu1 %2737 }
 0x3d8   : > { %4557 = vrcp.f32 %v2738_v28 }
 0x3db   : > { %v2747_v25 = vpop.xlane.xlu1 %2746 }
 0x3dc   : > { %4559 = vrcp.f32 %v2747_v25 }
 0x3e2   : > { %v4558_v39 = vpop.eup %4557 }
 0x3e3   : > { %v2759_v36 = vmul.f32 %v4558_v39, %v5202_v50  ;;  %v2045_v50 = vld [vmem:[#allocation3 + $0x68] sm:$0xff] }
 0x3e5   : > { %4328 = vmatmul.mubr.msk.f32.vlgmr.msra.gmra.mrb[10].mxu0 %vm2681_vm4, %v2759_v36  ;;  %v2770_v0 = vcombine.low %v5240_v18, %v2759_v36  ;;  %v2771_v23 = vcombine.high %v5240_v18, %v2759_v36  ;;  %v4441_v18 = vpack.c.bf16 %v2045_v50, %v2044_v37 }
 0x3e6   : > { %v4560_v35 = vpop.eup %4559  ;;  %4436 = vmatpush3.bf16.msra.mxu0 %v4435_v33  ;;  %4341 = vmatprep.mubr.msk.f32.mxu0 %vm4644_vm0, %v4645_v12 }
 0x3e7   : > { %v2765_v49 = vmul.f32 %v4560_v35, %v5213_v10  ;;  %4440 = vmatprep.subr.bf16.mxu0 %v4643_v5  ;;  %v2778_v54 = vrot.slane %v2770_v0, %v4842_v31  ;;  %v2785_v26 = vrot.slane %v2771_v23, %v4842_v31 }
 0x3e9   : > { %4342 = vmatmul.mubr.msk.f32.vlgmr.msra.gmra.mrb[12].mxu0 %vm2681_vm4, %v2763_v13  ;;  %4349 = vmatmul.mubr.msk.f32.vlgmr.msra.gmra.mrb[16].mxu1 %vm2681_vm4, %v2765_v49  ;;  %v2835_v48 = vcombine.high %v2778_v54, %v2794_v47  ;;  %v2834_v59 = vcombine.low %v2778_v54, %v2794_v47  ;;  %v2850_v60 = vcombine.low %v2785_v26, %v2801_v57 }
 0x3ea   : > { %4442 = vmatpush3.bf16.msra.mxu0 %v4441_v18  ;;  %4445 = vmatpush3.bf16.msra.mxu1 %v4444_v58  ;;  %v2851_v10 = vcombine.high %v2785_v26, %v2801_v57 }
 0x3eb   : > { %4355 = vmatprep.mubr.msk.f32.mxu0 %vm4644_vm0, %v4645_v12  ;;  %4362 = vmatprep.mubr.msk.f32.mxu1 %vm4644_vm0, %v4645_v12  ;;  %v5305_v44 = vrot.slane %v2835_v48, %v4853_v38  ;;  %v5311_v52 = vrot.slane %v2850_v60, %v4853_v38 }
 0x3ec   : > { %4446 = vmatprep.subr.bf16.mxu0 %v4643_v5  ;;  %v5326_v43 = vrot.slane %v2851_v10, %v4853_v38 }
 0x3ed   : > { %4356 = vmatmul.mubr.msk.f32.vlgmr.msra.gmra.mrb[14].mxu0 %vm2681_vm4, %v2767_v17 }
 0x3ee   : > { %4373 = vmatprep.mubr.msk.f32.mxu0 %vm4644_vm0, %v4645_v12 }
 0x3f4   : > { %v2753_v62 = vpop.xlane.xlu1 %2752 }
 0x3f5   : > { %4561 = vrcp.f32 %v2753_v62 }
 0x3ff   : > { %v4562_v42 = vpop.eup %4561 }
 0x400   : > { %v2769_v45 = vmul.f32 %v4562_v42, %v5225_v8  ;;  %v5308_v8 = vrot.slane %v2834_v59, %v4853_v38 }
 0x402   : > { %4363 = vmatmul.mubr.msk.f32.vlgmr.msra.gmra.mrb[18].mxu1 %vm2681_vm4, %v2769_v45  ;;  %v2818_v20 = vcombine.low %v2765_v49, %v2769_v45  ;;  %v2819_v63 = vcombine.high %v2765_v49, %v2769_v45 }
 0x404   : > { %v2826_v3 = vrot.slane %v2818_v20, %v4842_v31  ;;  %v2833_v6 = vrot.slane %v2819_v63, %v4842_v31  ;;  %v3843_v63 = vld [vmem:[%s5496_s4] sm:$0xff] }
 0x406   : > { %v2867_v7 = vcombine.high %v2810_v1, %v2826_v3  ;;  %v2866_v61 = vcombine.low %v2810_v1, %v2826_v3  ;;  %v2882_v12 = vcombine.low %v2817_v4, %v2833_v6  ;;  %v2883_v19 = vcombine.high %v2817_v4, %v2833_v6  ;;  %v3844_v1 = vld [vmem:[%s5496_s4 + $0x8] sm:$0xff] }
 0x408   : > { %v5314_v14 = vrot.slane %v2867_v7, %v4853_v38  ;;  %v5317_v15 = vrot.slane %v2866_v61, %v4853_v38  ;;  %v5320_v29 = vrot.slane %v2882_v12, %v4853_v38  ;;  %v5323_v34 = vrot.slane %v2883_v19, %v4853_v38 }
 0x409   : > { %v4447_v61 = vpack.c.bf16 %v3844_v1, %v3843_v63 }
 0x40a   : > { %v2900_v55 = vcombine.low %v5305_v44, %v5314_v14  ;;  %v2899_v56 = vcombine.high %v5308_v8, %v5317_v15  ;;  %v2902_v11 = vcombine.low %v5311_v52, %v5320_v29  ;;  %v2901_v2 = vcombine.high %v5305_v44, %v5314_v14 }
 0x40b   : > { %v2904_v22 = vcombine.low %v5326_v43, %v5323_v34  ;;  %v2903_v40 = vcombine.high %v5311_v52, %v5320_v29  ;;  %v2905_v9 = vcombine.high %v5326_v43, %v5323_v34  ;;  %v2898_v32 = vcombine.low %v5308_v8, %v5317_v15  ;;  %4448 = vmatpush3.bf16.msra.mxu0 %v4447_v61 }
 0x40c   : > { %4449 = vmatprep.subr.bf16.mxu0 %v4643_v5 }
 0x483   : > { %v3016_v30 = vpop.f32.mrb[10].mxu1 }
 0x484   : > { %v4315_v51 = vpop.f32.mrb[11].mxu1 }
 0x487   : > { %v3089_v16 = vpop.f32.mrb[12].mxu1 }
 0x488   : > { %v4322_v13 = vpop.f32.mrb[13].mxu1 }
 0x48c   : > { %v3235_v17 = vpop.f32.mrb[14].mxu1 }
 0x48d   : > { %v3547_v21 = vcombine.low %v3089_v16, %v3235_v17  ;;  %v3548_v24 = vcombine.high %v3089_v16, %v3235_v17  ;;  %v4336_v28 = vpop.f32.mrb[15].mxu1 }
 0x48f   : > { %v3555_v41 = vrot.slane %v3547_v21, %v4842_v31  ;;  %v3562_v33 = vrot.slane %v3548_v24, %v4842_v31 }
 0x4b8   : > { %v3162_v25 = vpop.f32.mrb[10].mxu0 }
 0x4b9   : > { %v3531_v27 = vcombine.low %v3016_v30, %v3162_v25  ;;  %v3532_v39 = vcombine.high %v3016_v30, %v3162_v25  ;;  %v4329_v36 = vpop.f32.mrb[11].mxu0 }
 0x4bb   : > { %v3539_v37 = vrot.slane %v3531_v27, %v4842_v31  ;;  %v3546_v46 = vrot.slane %v3532_v39, %v4842_v31 }
 0x4bc   : > { %v3308_v0 = vpop.f32.mrb[12].mxu0  ;;  %v3381_v23 = vpop.f32.mrb[16].mxu1 }
 0x4bd   : > { %v3595_v35 = vcombine.low %v3539_v37, %v3555_v41  ;;  %v3596_v47 = vcombine.high %v3539_v37, %v3555_v41  ;;  %v3611_v49 = vcombine.low %v3546_v46, %v3562_v33  ;;  %v3612_v50 = vcombine.high %v3546_v46, %v3562_v33  ;;  %v4343_v53 = vpop.f32.mrb[13].mxu0  ;;  %v4350_v54 = vpop.f32.mrb[17].mxu1 }
 0x4be   : > { %v3845_v53 = vld [vmem:[%s5496_s4 + $0x10] sm:$0xff] }
 0x4bf   : > { %v3603_v26 = vrot.slane %v3595_v35, %v4853_v38  ;;  %v3610_v57 = vrot.slane %v3596_v47, %v4853_v38  ;;  %v3619_v18 = vrot.slane %v3611_v49, %v4853_v38  ;;  %v3626_v58 = vrot.slane %v3612_v50, %v4853_v38 }
 0x4c0   : > { %v3454_v48 = vpop.f32.mrb[14].mxu0 }
 0x4c1   : > { %v4152_v59 = vcombine.low %v3603_v26, %v3610_v57  ;;  %v4154_v60 = vcombine.high %v3603_v26, %v3610_v57  ;;  %v4156_v10 = vcombine.low %v3619_v18, %v3626_v58  ;;  %v4158_v62 = vcombine.high %v3619_v18, %v3626_v58  ;;  %v4357_v42 = vpop.f32.mrb[15].mxu0 }
 0x4c2   : > { %v3563_v45 = vcombine.low %v3308_v0, %v3454_v48  ;;  %v3564_v20 = vcombine.high %v3308_v0, %v3454_v48 }
 0x4c3   : > { %v3675_v3 = vrot.slane %v4152_v59, %v4842_v31  ;;  %v3691_v4 = vrot.slane %v4154_v60, %v4842_v31  ;;  %v3707_v6 = vrot.slane %v4156_v10, %v4842_v31  ;;  %v3723_v7 = vrot.slane %v4158_v62, %v4842_v31 }
 0x4c4   : > { %v3571_v5 = vrot.slane %v3563_v45, %v4842_v31  ;;  %v3578_v37 = vrot.slane %v3564_v20, %v4842_v31 }
 0x4c5   : > { %v3732_v12 = vcombine.high %v3675_v3, %v3691_v4  ;;  %v3764_v19 = vcombine.high %v3707_v6, %v3723_v7  ;;  %v3731_v30 = vcombine.low %v3675_v3, %v3691_v4  ;;  %v3763_v51 = vcombine.low %v3707_v6, %v3723_v7 }
 0x4c7   : > { %v3746_v16 = vrot.slane %v3732_v12, %v4853_v38  ;;  %v3778_v13 = vrot.slane %v3764_v19, %v4853_v38  ;;  %v5365_v17 = vrot.slane %v3731_v30, %v4853_v38  ;;  %v5368_v21 = vrot.slane %v3763_v51, %v4853_v38 }
 0x4c9   : > { %v3797_v24 = vcombine.low %v3746_v16, %v3778_v13  ;;  %v3796_v28 = vcombine.high %v5365_v17, %v5368_v21  ;;  %v3798_v25 = vcombine.high %v3746_v16, %v3778_v13  ;;  %v3795_v27 = vcombine.low %v5365_v17, %v5368_v21 }
 0x4cb   : > { %3808 = vrot.lane.b32.xlu1 %v3797_v24, %s4656_s16  ;;  %3804 = vrot.lane.b32.xlu0 %v3796_v28, %s4657_s17  ;;  %s4661_s16 = smov 28   ;;  %s4662_s17 = smov 24  }
 0x4cf   : > { %3812 = vrot.lane.b32.xlu1 %v3798_v25, %s4658_s19  ;;  %s4663_s19 = smov 32  }
 0x4d5   : > { %v3527_v39 = vpop.f32.mrb[18].mxu1 }
 0x4d6   : > { %v3579_v36 = vcombine.low %v3381_v23, %v3527_v39  ;;  %v3580_v41 = vcombine.high %v3381_v23, %v3527_v39  ;;  %v4364_v33 = vpop.f32.mrb[19].mxu1  ;;  %v3846_v23 = vld [vmem:[%s5496_s4 + $0x18] sm:$0xff] }
 0x4d7   : > { %v4450_v58 = vpack.c.bf16 %v3846_v23, %v3845_v53  ;;  %v4160_v33 = vld [vmem:[%s5497_s5] ss:$0 sm:$0xff] }
 0x4d8   : > { %v3587_v46 = vrot.slane %v3579_v36, %v4842_v31  ;;  %v3594_v0 = vrot.slane %v3580_v41, %v4842_v31 }
 0x4d9   : > { %4451 = vmatpush3.bf16.msra.mxu0 %v4450_v58 }
 0x4da   : > { %v3627_v35 = vcombine.low %v3571_v5, %v3587_v46  ;;  %v3628_v47 = vcombine.high %v3571_v5, %v3587_v46  ;;  %v3643_v49 = vcombine.low %v3578_v37, %v3594_v0  ;;  %v3644_v50 = vcombine.high %v3578_v37, %v3594_v0 }
 0x4dc   : > { %v3635_v54 = vrot.slane %v3627_v35, %v4853_v38  ;;  %v3642_v26 = vrot.slane %v3628_v47, %v4853_v38  ;;  %v3651_v57 = vrot.slane %v3643_v49, %v4853_v38  ;;  %v3658_v18 = vrot.slane %v3644_v50, %v4853_v38 }
 0x4de   : > { %v4153_v48 = vcombine.low %v3635_v54, %v3642_v26  ;;  %v4155_v59 = vcombine.high %v3635_v54, %v3642_v26  ;;  %v4157_v60 = vcombine.low %v3651_v57, %v3658_v18  ;;  %v4159_v10 = vcombine.high %v3651_v57, %v3658_v18 }
 0x4e0   : > { %v3682_v62 = vrot.slane %v4153_v48, %v4842_v31  ;;  %v3698_v42 = vrot.slane %v4155_v59, %v4842_v31  ;;  %v3714_v45 = vrot.slane %v4157_v60, %v4842_v31  ;;  %v3730_v20 = vrot.slane %v4159_v10, %v4842_v31 }
 0x4e2   : > { %v3747_v63 = vcombine.low %v3682_v62, %v3698_v42  ;;  %v3779_v1 = vcombine.low %v3714_v45, %v3730_v20  ;;  %v3748_v3 = vcombine.high %v3682_v62, %v3698_v42  ;;  %v3780_v4 = vcombine.high %v3714_v45, %v3730_v20 }
 0x4e4   : > { %v3755_v6 = vrot.slane %v3747_v63, %v4853_v38  ;;  %v3787_v7 = vrot.slane %v3779_v1, %v4853_v38  ;;  %v3762_v61 = vrot.slane %v3748_v3, %v4853_v38  ;;  %v3794_v12 = vrot.slane %v3780_v4, %v4853_v38 }
 0x4e6   : > { %v3800_v19 = vcombine.high %v3755_v6, %v3787_v7  ;;  %v3799_v30 = vcombine.low %v3755_v6, %v3787_v7  ;;  %v3802_v51 = vcombine.high %v3762_v61, %v3794_v12  ;;  %v3801_v16 = vcombine.low %v3762_v61, %v3794_v12 }
 0x4e8   : > { %3820 = vrot.lane.b32.xlu1 %v3800_v19, %s4659_s10  ;;  %3816 = vrot.lane.b32.xlu0 %v3799_v30, %s4660_s15  ;;  %s307_s10 = sand.u32 1, %s4625_s25  }
 0x4ec   : > { %3828 = vrot.lane.b32.xlu1 %v3802_v51, %s4661_s16  ;;  %3824 = vrot.lane.b32.xlu0 %v3801_v16, %s4662_s17 }
 0x4f0   : > { %2911 = vrot.lane.b32.xlu1 %v2900_v55, %s4663_s19  ;;  %2907 = vrot.lane.b32.xlu0 %v2899_v56, %s4660_s15  ;;  %s4072_s15 = sshll.u32 %s307_s10, 3  ;;  %s4163_s19 = sshll.u32 %s4633_s27, 7 }
 0x4f1   : > { %s5444_s20 = scalar_lea.hbm %s5498_s6, %s4163_s19  ;;  %s4667_s27 = smov [#allocation4]  }
 0x4f4   : > { %2919 = vrot.lane.b32.xlu1 %v2902_v11, %s4664_s21  ;;  %2915 = vrot.lane.b32.xlu0 %v2901_v2, %s4665_s22  ;;  %s309_s21 = scalar_lea.vmem [#allocation4], %s4072_s15 }
 0x4f5   : > { %s3950_s22 = sshll.u32 %s309_s21, 4  ;;  %s5446_s22 = int_to_ptr.vmem [resolvable:$true] %s3950_s22 }
 0x4f8   : > { %2927 = vrot.lane.b32.xlu1 %v2904_v22, %s4653_s23  ;;  %2923 = vrot.lane.b32.xlu0 %v2903_v40, %s4666_s30  ;;  %s4563_s23 = scalar_lea.vmem %s5446_s22, 128 }
 0x4f9   : > { %p4564_p12 = scmp.ne.s32.totalorder %s5446_s22, %s4563_s23 }
 0x4fb   : > { %p4565_p13 = pnand %p4564_p12, %p4748_p4 }
 0x4fc   : > { %2931 = vrot.lane.b32.xlu0 %v2905_v9, %s4649_s18  ;;  %s3929_s18 = scalar_lea.sflag [#allocation5], %s307_s10 }
 0x4fd   : > { %p4566_p0 = pneg %p4565_p13 }
 0x53d   : > { %v3809_v31 = vpop.permute.xlu1 %3808  ;;  %v3805_v38 = vpop.permute.xlu0 %3804 }
 0x53e   : > { %v3831_v44 = vsel %vm1338_vm2, %v3795_v27, %v3805_v38 }
 0x53f   : > { %v3833_v55 = vsel %vm3832_vm5, %v3831_v44, %v3809_v31 }
 0x541   : > { %v3813_v14 = vpop.permute.xlu1 %3812 }
 0x542   : > { %v3835_v56 = vsel %vm3834_vm6, %v3833_v55, %v3813_v14 }
 0x55a   : > { %v3821_v11 = vpop.permute.xlu1 %3820  ;;  %v3817_v52 = vpop.permute.xlu0 %3816 }
 0x55b   : > { %v3836_v29 = vsel %vm2681_vm4, %v3835_v56, %v3817_v52 }
 0x55c   : > { %v3838_v43 = vsel %vm3837_vm7, %v3836_v29, %v3821_v11 }
 0x55e   : > { %v3829_v34 = vpop.permute.xlu1 %3828  ;;  %v3825_v2 = vpop.permute.xlu0 %3824 }
 0x55f   : > { %v3840_v22 = vsel %vm3839_vm8, %v3838_v43, %v3825_v2 }
 0x560   : > { %v3842_v40 = vsel %vm3841_vm9, %v3840_v22, %v3829_v34 }
 0x561   : > { %4374 = vmatmul.mubr.msk.f32.vlgmr.msra.gmra.mrb[16].mxu0 %vm348_vm1, %v3842_v40 }
 0x562   : > { %v2912_v9 = vpop.permute.xlu1 %2911  ;;  %v2908_v13 = vpop.permute.xlu0 %2907 }
 0x563   : > { %v2934_v17 = vsel %vm2681_vm4, %v2898_v32, %v2908_v13 }
 0x564   : > { %v2935_v24 = vsel %vm348_vm1, %v2934_v17, %v2912_v9 }
 0x566   : > { %v2920_v21 = vpop.permute.xlu1 %2919  ;;  %v2916_v28 = vpop.permute.xlu0 %2915 }
 0x567   : > { %v2937_v25 = vsel %vm2936_vm10, %v2935_v24, %v2916_v28 }
 0x568   : > { %v2939_v27 = vsel %vm2938_vm11, %v2937_v25, %v2920_v21 }
 0x56a   : > { %v2924_v39 = vpop.permute.xlu0 %2923  ;;  %v2928_v36 = vpop.permute.xlu1 %2927 }
 0x56b   : > { %v2941_v41 = vsel %vm2940_vm12, %v2939_v27, %v2924_v39 }
 0x56c   : > { %v2943_v8 = vsel %vm2942_vm13, %v2941_v41, %v2928_v36 }
 0x56e   : > { %v2932_v15 = vpop.permute.xlu0 %2931 }
 0x56f   : > { %v2945_v32 = vsel %vm2944_vm14, %v2943_v8, %v2932_v15 }
 0x570   : > { %2946 = vst [vmem:[%s337_s8] sm:$0xff] %v2945_v32  ;;  %s4567_s8 = sshll.u32 %s4667_s27, 4  ;;  %s4568_s8 = int_to_ptr.vmem [resolvable:$false] %s4567_s8 }
 0x571   : > { %s4569_s15 = scalar_lea.vmem %s4568_s8, 256  ;;  %p4570_p1 = scmp.lt.s32.totalorder %s5446_s22, %s4568_s8 }
 0x572   : > { %p4571_p2 = scmp.lt.s32.totalorder %s4569_s15, %s4563_s23 }
 0x574   : > { %p4572_p3 = por %p4571_p2, %p4570_p1 }
 0x576   : > { %p4573_p5 = pnand %p4572_p3, %p4566_p0 }
 0x634   : > { %v3923_v5 = vpop.f32.mrb[16].mxu0 }
 0x635   : > { %v3924_v37 = vadd.f32 %v4160_v33, %v3923_v5  ;;  %v4375_v46 = vpop.f32.mrb[17].mxu0 }
 0x637   : > { %3927 = vst.msk [vmem:[%s309_s21] sm:$0xff] %vm348_vm1, %v3924_v37 }
 0x638   : > { %4576 = shalt.err (!%p4573_p5)
}
 0x639   : > { %s4577_s10 = scalar_lea.hbm %s5444_s20, 128  ;;  %s4581_s19 = scalar_lea.hbm %s5498_s6, 256 }
 0x63a   : > { %p4578_p6 = scmp.ne.s32.totalorder %s5444_s20, %s4577_s10  ;;  %p4582_p10 = scmp.lt.u32.totalorder %s5444_s20, %s5498_s6 }
 0x63b   : > { %p4583_p11 = scmp.lt.u32.totalorder %s4581_s19, %s4577_s10  ;;  %p4585_p13 = scmp.lt.u32.totalorder %s4577_s10, %s5444_s20 }
 0x63c   : > { %p4579_p7 = pnand %p4578_p6, %p4748_p4 }
 0x63d   : > { %p4584_p12 = por %p4583_p11, %p4582_p10 }
 0x63e   : > { %p4580_p9 = pneg %p4579_p7 }
 0x63f   : > { %p4586_p0 = por %p4585_p13, %p4584_p12 }
 0x641   : > { %p4587_p1 = pnand %p4586_p0, %p4580_p9 }
 0x643   : > { %4590 = shalt.err (!%p4587_p1)
}
 0x644   : > { %4452 = dma.vmem_to_hbm [thread:$0]  (%p4748_p4), %s5446_s22, 128, %s5444_s20, %s3929_s18  }
 0x645 PF: > { %p4458_p2 = scmp.ge.s32.totalorder %s4641_s29, 2  ;;  %s3965_s30 = sand.u32 1, %s4621_s24  }
 0x646   : > { %s3966_s23 = scalar_lea.sflag [#allocation5], %s3965_s30 }
 0x647   : > { %p4455_p3 = pnand %p4458_p2, %p4755_p8 }
 0x649   : > { %4616 = dma.done.wait (!%p4455_p3), %s3966_s23, 128  }
 0x64a   : > { %4618 = vsyncadd (!%p4455_p3), %s3966_s23, 4294967168  ;;  %s21_s29 = sadd.s32 1, %s4641_s29   ;;  %s5504_s24 = smov %s4625_s25 }
 0x64b   : > { %p18_p5 = scmp.ge.s32.totalorder %s21_s29, 4   ;;  %s5505_s25 = smov %s4629_s26 }
 0x64c   : > { %s5506_s26 = smov %s4761_s14  ;;  %s5507_s27 = smov %s4637_s28 }
 0x64d   : > { %s5508_s28 = smov %s5510_s9  ;;  %20 = sbr.rel (!%p18_p5) target bundleno = 4 (0x4), region = 98 }
 0x654   :  { %3981 = vsyncpa [#allocation5], 1 }
 0x655   :  { %3983 = vsyncpa [#allocation5 + $0x1], 1 }

</bundles_post_ra>
